<compile_context>
chip_gen: v7x
topology: tpu7x:2x2x1
jax: 0.10.0
libtpu: 0.0.40
codegen_flags: <defaults>
</compile_context>

<pallas_src>
import functools
import math

import jax
import jax.numpy as jnp
from jax import lax
from jax.experimental import pallas as pl
from jax.experimental.pallas import tpu as pltpu


def _encoder_kernel(x_ref, wqkv_ref, bqkv_ref, wo_ref, bo_ref,
                    w1_ref, b1_ref, w2_ref, b2_ref,
                    g1_ref, be1_ref, g2_ref, be2_ref,
                    o_ref, ctx_s,
                    *, S, D, H, BB, mxu_dtype, approx_recip, activation):
    hd = D // H
    M = BB * S

    # ---- activations for this block of batches as one (M, D) slab ----------
    if BB == 1:
        x = x_ref[0]                                   # (S, D) f32
    else:
        x = x_ref[...].reshape(M, D)                   # (BB*S, D) f32

    # ---- fused QKV projection; 1/sqrt(hd) already folded into Q weights ----
    qkv = jnp.dot(x.astype(mxu_dtype), wqkv_ref[...],
                  preferred_element_type=jnp.float32) + bqkv_ref[...]   # (M, 3D)

    # ---- attention, one (batch, head) at a time -----------------------------
    # Only one (S, S) f32 score/prob tile is live at a time; each head's
    # context goes straight into its lane slice of ctx_s, so the output
    # projection below contracts over the full D = H*hd in one MXU pass.
    for b in range(BB):
        r0 = b * S
        for h in range(H):
            q = qkv[r0:r0 + S, h * hd:(h + 1) * hd].astype(mxu_dtype)
            k = qkv[r0:r0 + S, D + h * hd:D + (h + 1) * hd].astype(mxu_dtype)
            v = qkv[r0:r0 + S, 2 * D + h * hd:2 * D + (h + 1) * hd].astype(mxu_dtype)

            s = lax.dot_general(q, k, (((1,), (1,)), ((), ())),
                                preferred_element_type=jnp.float32)     # (S, S)
            s = s - jnp.max(s, axis=-1, keepdims=True)
            p = jnp.exp(s)
            denom = jnp.sum(p, axis=-1, keepdims=True)
            if approx_recip:
                p = p * pl.reciprocal(denom, approx=True)   # EUP slot
            else:
                p = p / denom
            ctx = jnp.dot(p.astype(mxu_dtype), v,
                          preferred_element_type=jnp.float32)           # (S, hd)
            ctx_s[r0:r0 + S, h * hd:(h + 1) * hd] = ctx.astype(mxu_dtype)

    # ---- output projection (full-D contraction) + residual + layernorm1 ----
    attn = jnp.dot(ctx_s[...], wo_ref[...],
                   preferred_element_type=jnp.float32) + bo_ref[...]
    x1 = x + attn                               # dropout1 == identity in eval
    mu = jnp.mean(x1, axis=-1, keepdims=True)
    var = jnp.mean((x1 - mu) * (x1 - mu), axis=-1, keepdims=True)
    x1 = (x1 - mu) * lax.rsqrt(var + 1e-5) * g1_ref[...] + be1_ref[...]

    # ---- feed-forward (dropout == identity) ---------------------------------
    h1 = jnp.dot(x1.astype(mxu_dtype), w1_ref[...],
                 preferred_element_type=jnp.float32) + b1_ref[...]
    if activation == "relu":
        h1 = jnp.maximum(h1, 0.0)
    else:
        # TODO(synk): PyTorch F.gelu defaults to the exact erf form; tanh
        #             approximation used here (EUP-friendly).
        h1 = jax.nn.gelu(h1, approximate=True)
    ff = jnp.dot(h1.astype(mxu_dtype), w2_ref[...],
                 preferred_element_type=jnp.float32) + b2_ref[...]

    # ---- residual + layernorm2 (dropout2 == identity) -----------------------
    x2 = x1 + ff
    mu2 = jnp.mean(x2, axis=-1, keepdims=True)
    var2 = jnp.mean((x2 - mu2) * (x2 - mu2), axis=-1, keepdims=True)
    out = (x2 - mu2) * lax.rsqrt(var2 + 1e-5) * g2_ref[...] + be2_ref[...]

    if BB == 1:
        o_ref[0] = out
    else:
        o_ref[...] = out.reshape(BB, S, D)


def _auto_block_batch(B, S):
    """Largest BB dividing B with BB*S <= 1024 while keeping grid length >= 2
    (so both v7x TensorCores get work under dimension_semantics=('parallel',))."""
    if S % 8 != 0:
        return 1
    bb = 1
    for cand in range(1, B + 1):
        if B % cand == 0 and cand * S <= 1024 and (B // cand) >= 2:
            bb = cand
    return bb


def _vmem_cap_bytes():
    try:
        info = pltpu.get_tpu_info()
        cap = getattr(info, "vmem_capacity_bytes", None)
        if cap:
            return int(cap * 0.85)
    except Exception:
        pass
    return 48 * 1024 * 1024     # conservative: fits within v7x's 64 MiB VMEM


def stransformer_encoder_layer(src, params, nhead, *,
                               mxu_dtype=jnp.bfloat16,
                               approx_recip=True,
                               activation="relu",
                               block_batch=None):
    """src: (S, B, D) float32, PyTorch seq-first layout.

    mxu_dtype: MXU operand dtype for ALL matmuls (projections, FFN, QK^T, PV).
      bfloat16 (default) is the native MXU rate on v5e/v6e/v7x; accumulation
      and all softmax/LayerNorm/residual math stay f32.  Use jnp.float32 plus
      approx_recip=False for bit-closer parity with the PyTorch reference.
    block_batch: batches per grid step (None = auto).
    """
    if activation not in ("relu", "gelu"):
        raise RuntimeError("activation should be relu/gelu, not %s." % activation)

    S, B, D = src.shape
    H = nhead
    assert D % H == 0, "d_model must be divisible by nhead"
    hd = D // H
    DFF = params["linear1_w"].shape[0]

    if block_batch is None:
        BB = _auto_block_batch(B, S)
    else:
        BB = int(block_batch)
        assert B % BB == 0
        assert BB == 1 or S % 8 == 0

    # TODO(synk): accept batch-major inputs to avoid this extra HBM transpose pass.
    x = jnp.transpose(src, (1, 0, 2))                    # (B, S, D) batch-major

    # plain-JAX glue: fold the 1/sqrt(hd) scale into the Q part of the fused
    # QKV weights/bias, transpose weights, reshape biases to (1, N).
    scale = 1.0 / math.sqrt(hd)
    w_in, b_in = params["in_proj_w"], params["in_proj_b"]     # (3D, D), (3D,)
    w_in_scaled = jnp.concatenate([w_in[:D] * scale, w_in[D:]], axis=0)
    b_in_scaled = jnp.concatenate([b_in[:D] * scale, b_in[D:]], axis=0)

    def prep_w(w):                                       # MXU-operand dtype
        return w.astype(mxu_dtype)

    args = (
        x,
        prep_w(w_in_scaled.T), b_in_scaled[None, :],
        prep_w(params["out_proj_w"].T), params["out_proj_b"][None, :],
        prep_w(params["linear1_w"].T), params["linear1_b"][None, :],
        prep_w(params["linear2_w"].T), params["linear2_b"][None, :],
        params["norm1_g"][None, :], params["norm1_b"][None, :],
        params["norm2_g"][None, :], params["norm2_b"][None, :],
    )

    # ---- advisory cost estimate ---------------------------------------------
    flops = 2 * B * S * D * 3 * D            # fused QKV projection
    flops += 2 * B * H * S * S * hd * 2      # QK^T and PV
    flops += 2 * B * S * D * D               # output projection
    flops += 2 * B * S * D * DFF * 2         # FFN
    bytes_accessed = sum(int(a.size) * a.dtype.itemsize for a in args)
    bytes_accessed += B * S * D * 4          # output
    cost = pl.CostEstimate(flops=flops,
                           transcendentals=B * H * S * S + 4 * B * S,
                           bytes_accessed=bytes_accessed)

    # ---- VMEM budget computed from actual tile sizes ------------------------
    mxu_itemsize = jnp.dtype(mxu_dtype).itemsize
    M = BB * S
    act_bytes = M * D * 4
    weight_bytes = (D * 3 * D + D * D + D * DFF + DFF * D) * mxu_itemsize
    small_bytes = (3 * D + 2 * D + DFF + 4 * D) * 4
    needed = (4 * act_bytes                      # x in + out, double buffered
              + 2 * weight_bytes                 # weights (worst case: 2 buffers)
              + 2 * small_bytes
              + M * 3 * D * 4                    # qkv intermediate
              + 2 * S * S * 4                    # one head's scores + probs
              + M * D * mxu_itemsize             # ctx scratch
              + M * DFF * 4                      # FFN intermediate
              + 3 * act_bytes)                   # x1 / x2 / temporaries
    vmem_limit = int(min(_vmem_cap_bytes(), max(int(needed * 1.5), 32 << 20)))

    kernel = functools.partial(_encoder_kernel, S=S, D=D, H=H, BB=BB,
                               mxu_dtype=mxu_dtype, approx_recip=approx_recip,
                               activation=activation)

    x_spec = pl.BlockSpec((BB, S, D), lambda i: (i, 0, 0))
    out_spec = pl.BlockSpec((BB, S, D), lambda i: (i, 0, 0))

    def _const_spec(a, single_buffer):
        nd = a.ndim
        index_map = lambda i: (0,) * nd
        if single_buffer:
            # grid-invariant weights: no double buffer needed
            return pl.BlockSpec(a.shape, index_map, pipeline_mode=pl.Buffered(1))
        return pl.BlockSpec(a.shape, index_map)

    def _run(single_buffer_weights):
        in_specs = [x_spec] + [_const_spec(a, single_buffer_weights)
                               for a in args[1:]]
        return pl.pallas_call(
            kernel,
            out_shape=jax.ShapeDtypeStruct((B, S, D), jnp.float32),
            grid=(B // BB,),
            in_specs=in_specs,
            out_specs=out_spec,
            scratch_shapes=[pltpu.VMEM((BB * S, D), mxu_dtype)],
            compiler_params=pltpu.CompilerParams(
                dimension_semantics=("parallel",),      # megacore shard on v7x
                vmem_limit_bytes=vmem_limit),
            cost_estimate=cost,
        )(*args)

    try:
        out = _run(True)
    except Exception:
        # fallback if pipeline_mode / Buffered(1) is unsupported in this version
        out = _run(False)

    return out.transpose(1, 0, 2)                        # back to (S, B, D)


# ---- pure-JAX reference (for correctness check) -----------------------------
def _reference(src, params, nhead):
    S, B, D = src.shape
    hd = D // nhead
    w_in, b_in = params["in_proj_w"], params["in_proj_b"]
    x = src  # (S, B, D)
    qkv = jnp.einsum("sbd,ed->sbe", x, w_in) + b_in
    q, k, v = qkv[..., :D], qkv[..., D:2 * D], qkv[..., 2 * D:]
    q = q * (hd ** -0.5)

    def split(a):  # (S,B,D) -> (B, H, S, hd)
        return a.reshape(S, B, nhead, hd).transpose(1, 2, 0, 3)

    qh, kh, vh = split(q), split(k), split(v)
    scores = jnp.einsum("bhqd,bhkd->bhqk", qh, kh)
    p = jax.nn.softmax(scores, axis=-1)
    o = jnp.einsum("bhqk,bhkd->bhqd", p, vh)           # (B,H,S,hd)
    o = o.transpose(2, 0, 1, 3).reshape(S, B, D)
    o = jnp.einsum("sbd,ed->sbe", o, params["out_proj_w"]) + params["out_proj_b"]

    def ln(a, g, b):
        mu = a.mean(-1, keepdims=True)
        var = ((a - mu) ** 2).mean(-1, keepdims=True)
        return (a - mu) / jnp.sqrt(var + 1e-5) * g + b

    x1 = ln(x + o, params["norm1_g"], params["norm1_b"])
    h = jnp.maximum(jnp.einsum("sbd,fd->sbf", x1, params["linear1_w"])
                    + params["linear1_b"], 0.0)
    ff = jnp.einsum("sbf,df->sbd", h, params["linear2_w"]) + params["linear2_b"]
    return ln(x1 + ff, params["norm2_g"], params["norm2_b"])


if __name__ == "__main__":
    S, B, D, H, DFF = 8, 2, 32, 4, 64
    key = jax.random.PRNGKey(0)
    ks = jax.random.split(key, 10)

    params = {
        "in_proj_w": 0.1 * jax.random.normal(ks[0], (3 * D, D), jnp.float32),
        "in_proj_b": 0.1 * jax.random.normal(ks[1], (3 * D,), jnp.float32),
        "out_proj_w": 0.1 * jax.random.normal(ks[2], (D, D), jnp.float32),
        "out_proj_b": 0.1 * jax.random.normal(ks[3], (D,), jnp.float32),
        "linear1_w": 0.1 * jax.random.normal(ks[4], (DFF, D), jnp.float32),
        "linear1_b": 0.1 * jax.random.normal(ks[5], (DFF,), jnp.float32),
        "linear2_w": 0.1 * jax.random.normal(ks[6], (D, DFF), jnp.float32),
        "linear2_b": 0.1 * jax.random.normal(ks[7], (D,), jnp.float32),
        "norm1_g": jnp.ones((D,), jnp.float32),
        "norm1_b": jnp.zeros((D,), jnp.float32),
        "norm2_g": jnp.ones((D,), jnp.float32),
        "norm2_b": jnp.zeros((D,), jnp.float32),
    }

    src = jax.random.normal(ks[8], (S, B, D), jnp.float32)
    ref = _reference(src, params, H)

    # exact path: f32 MXU operands + exact softmax reciprocal
    out_f32 = jax.block_until_ready(
        stransformer_encoder_layer(src, params, H,
                                   mxu_dtype=jnp.float32, approx_recip=False))
    assert out_f32.shape == (S, B, D)
    err_f32 = float(jnp.max(jnp.abs(out_f32 - ref)))
    assert jnp.allclose(out_f32, ref, atol=1e-4, rtol=1e-4), err_f32

    # default path: bf16 MXU operands everywhere (projections, FFN, attention)
    out_bf16 = jax.block_until_ready(stransformer_encoder_layer(src, params, H))
    err_bf16 = float(jnp.max(jnp.abs(out_bf16 - ref)))
    assert jnp.allclose(out_bf16, ref, atol=5e-2, rtol=5e-2), err_bf16

    # multi-batch blocking path (both batches in a single grid step)
    out_bb = jax.block_until_ready(
        stransformer_encoder_layer(src, params, H, block_batch=2))
    err_bb = float(jnp.max(jnp.abs(out_bb - out_bf16)))
    assert jnp.allclose(out_bb, out_bf16, atol=1e-3, rtol=1e-3), err_bb

    print("KERNEL_OK")
</pallas_src>

<mosaic_0001>
module attributes {stable_mosaic.version = 11 : i64} {
  func.func @_encoder_kernel(%arg0: i32, %arg1: memref<1x8x32xf32, #tpu.memory_space<vmem>>, %arg2: memref<32x96xf32, #tpu.memory_space<vmem>>, %arg3: memref<1x96xf32, #tpu.memory_space<vmem>>, %arg4: memref<32x32xf32, #tpu.memory_space<vmem>>, %arg5: memref<1x32xf32, #tpu.memory_space<vmem>>, %arg6: memref<32x64xf32, #tpu.memory_space<vmem>>, %arg7: memref<1x64xf32, #tpu.memory_space<vmem>>, %arg8: memref<64x32xf32, #tpu.memory_space<vmem>>, %arg9: memref<1x32xf32, #tpu.memory_space<vmem>>, %arg10: memref<1x32xf32, #tpu.memory_space<vmem>>, %arg11: memref<1x32xf32, #tpu.memory_space<vmem>>, %arg12: memref<1x32xf32, #tpu.memory_space<vmem>>, %arg13: memref<1x32xf32, #tpu.memory_space<vmem>>, %arg14: memref<1x8x32xf32, #tpu.memory_space<vmem>>, %arg15: memref<8x32xf32, #tpu.memory_space<vmem>>) attributes {dimension_semantics = [#tpu.dimension_semantics<parallel>], iteration_bounds = array<i64: 2>, scalar_prefetch = 0 : i64, scratch_operands = 1 : i64, tpu.core_type = #tpu.core_type<tc>, window_params = [{transform_indices = @transform_0, window_bounds = array<i64: 1, 8, 32>}, {pipeline_mode = #tpu.pipeline_mode<synchronous>, transform_indices = @transform_1, window_bounds = array<i64: 32, 96>}, {pipeline_mode = #tpu.pipeline_mode<synchronous>, transform_indices = @transform_2, window_bounds = array<i64: 1, 96>}, {pipeline_mode = #tpu.pipeline_mode<synchronous>, transform_indices = @transform_3, window_bounds = array<i64: 32, 32>}, {pipeline_mode = #tpu.pipeline_mode<synchronous>, transform_indices = @transform_4, window_bounds = array<i64: 1, 32>}, {pipeline_mode = #tpu.pipeline_mode<synchronous>, transform_indices = @transform_5, window_bounds = array<i64: 32, 64>}, {pipeline_mode = #tpu.pipeline_mode<synchronous>, transform_indices = @transform_6, window_bounds = array<i64: 1, 64>}, {pipeline_mode = #tpu.pipeline_mode<synchronous>, transform_indices = @transform_7, window_bounds = array<i64: 64, 32>}, {pipeline_mode = #tpu.pipeline_mode<synchronous>, transform_indices = @transform_8, window_bounds = array<i64: 1, 32>}, {pipeline_mode = #tpu.pipeline_mode<synchronous>, transform_indices = @transform_9, window_bounds = array<i64: 1, 32>}, {pipeline_mode = #tpu.pipeline_mode<synchronous>, transform_indices = @transform_10, window_bounds = array<i64: 1, 32>}, {pipeline_mode = #tpu.pipeline_mode<synchronous>, transform_indices = @transform_11, window_bounds = array<i64: 1, 32>}, {pipeline_mode = #tpu.pipeline_mode<synchronous>, transform_indices = @transform_12, window_bounds = array<i64: 1, 32>}, {transform_indices = @transform_13, window_bounds = array<i64: 1, 8, 32>}]} {
    %c0 = arith.constant 0 : index
    %c0_0 = arith.constant 0 : index
    %c0_1 = arith.constant 0 : index
    %0 = vector.load %arg1[%c0, %c0_0, %c0_1] : memref<1x8x32xf32, #tpu.memory_space<vmem>>, vector<1x8x32xf32>
    %1 = vector.shape_cast %0 : vector<1x8x32xf32> to vector<8x32xf32>
    %c0_2 = arith.constant 0 : index
    %c0_3 = arith.constant 0 : index
    %2 = vector.load %arg2[%c0_2, %c0_3] : memref<32x96xf32, #tpu.memory_space<vmem>>, vector<32x96xf32>
    %cst = arith.constant dense<0.000000e+00> : vector<8x96xf32>
    %3 = tpu.matmul %1, %2, %cst {dimension_numbers = #tpu.dot_dimension_numbers<[1], [0], [0], [1], [0, 0, 1, 1], [], []>} : vector<8x32xf32>, vector<32x96xf32>, vector<8x96xf32> -> vector<8x96xf32>
    %c0_4 = arith.constant 0 : index
    %c0_5 = arith.constant 0 : index
    %4 = vector.load %arg3[%c0_4, %c0_5] : memref<1x96xf32, #tpu.memory_space<vmem>>, vector<1x96xf32>
    %5 = vector.broadcast %4 : vector<1x96xf32> to vector<8x96xf32>
    %6 = arith.addf %3, %5 : vector<8x96xf32>
    %7 = vector.extract_strided_slice %6 {offsets = [0, 0], sizes = [8, 8], strides = [1, 1]} : vector<8x96xf32> to vector<8x8xf32>
    %8 = vector.extract_strided_slice %6 {offsets = [0, 32], sizes = [8, 8], strides = [1, 1]} : vector<8x96xf32> to vector<8x8xf32>
    %9 = vector.extract_strided_slice %6 {offsets = [0, 64], sizes = [8, 8], strides = [1, 1]} : vector<8x96xf32> to vector<8x8xf32>
    %cst_6 = arith.constant dense<0.000000e+00> : vector<8x8xf32>
    %10 = tpu.matmul %7, %8, %cst_6 {dimension_numbers = #tpu.dot_dimension_numbers<[1], [1], [0], [0], [0, 0, 1, 0], [], []>} : vector<8x8xf32>, vector<8x8xf32>, vector<8x8xf32> -> vector<8x8xf32>
    %cst_7 = arith.constant dense<0xFF800000> : vector<8xf32>
    %11 = vector.multi_reduction <maximumf>, %10, %cst_7 [1] : vector<8x8xf32> to vector<8xf32>
    %12 = vector.shape_cast %11 : vector<8xf32> to vector<8x1xf32>
    %13 = vector.broadcast %12 : vector<8x1xf32> to vector<8x8xf32>
    %14 = arith.subf %10, %13 : vector<8x8xf32>
    %15 = math.exp %14 : vector<8x8xf32>
    %cst_8 = arith.constant dense<0.000000e+00> : vector<8xf32>
    %16 = vector.multi_reduction <add>, %15, %cst_8 [1] : vector<8x8xf32> to vector<8xf32>
    %17 = vector.shape_cast %16 : vector<8xf32> to vector<8x1xf32>
    %18 = vector.broadcast %17 : vector<8x1xf32> to vector<8x8xf32>
    %19 = arith.divf %15, %18 : vector<8x8xf32>
    %cst_9 = arith.constant dense<0.000000e+00> : vector<8x8xf32>
    %20 = tpu.matmul %19, %9, %cst_9 {dimension_numbers = #tpu.dot_dimension_numbers<[1], [0], [0], [1], [0, 0, 1, 1], [], []>} : vector<8x8xf32>, vector<8x8xf32>, vector<8x8xf32> -> vector<8x8xf32>
    %c0_10 = arith.constant 0 : index
    %c0_11 = arith.constant 0 : index
    %21 = vector.load %arg15[%c0_10, %c0_11] : memref<8x32xf32, #tpu.memory_space<vmem>>, vector<8x8xf32>
    tpu.vector_store %arg15[%c0_10, %c0_11], %20 {strides = array<i32>} : memref<8x32xf32, #tpu.memory_space<vmem>>, vector<8x8xf32>,
    %22 = vector.extract_strided_slice %6 {offsets = [0, 8], sizes = [8, 8], strides = [1, 1]} : vector<8x96xf32> to vector<8x8xf32>
    %23 = vector.extract_strided_slice %6 {offsets = [0, 40], sizes = [8, 8], strides = [1, 1]} : vector<8x96xf32> to vector<8x8xf32>
    %24 = vector.extract_strided_slice %6 {offsets = [0, 72], sizes = [8, 8], strides = [1, 1]} : vector<8x96xf32> to vector<8x8xf32>
    %cst_12 = arith.constant dense<0.000000e+00> : vector<8x8xf32>
    %25 = tpu.matmul %22, %23, %cst_12 {dimension_numbers = #tpu.dot_dimension_numbers<[1], [1], [0], [0], [0, 0, 1, 0], [], []>} : vector<8x8xf32>, vector<8x8xf32>, vector<8x8xf32> -> vector<8x8xf32>
    %cst_13 = arith.constant dense<0xFF800000> : vector<8xf32>
    %26 = vector.multi_reduction <maximumf>, %25, %cst_13 [1] : vector<8x8xf32> to vector<8xf32>
    %27 = vector.shape_cast %26 : vector<8xf32> to vector<8x1xf32>
    %28 = vector.broadcast %27 : vector<8x1xf32> to vector<8x8xf32>
    %29 = arith.subf %25, %28 : vector<8x8xf32>
    %30 = math.exp %29 : vector<8x8xf32>
    %cst_14 = arith.constant dense<0.000000e+00> : vector<8xf32>
    %31 = vector.multi_reduction <add>, %30, %cst_14 [1] : vector<8x8xf32> to vector<8xf32>
    %32 = vector.shape_cast %31 : vector<8xf32> to vector<8x1xf32>
    %33 = vector.broadcast %32 : vector<8x1xf32> to vector<8x8xf32>
    %34 = arith.divf %30, %33 : vector<8x8xf32>
    %cst_15 = arith.constant dense<0.000000e+00> : vector<8x8xf32>
    %35 = tpu.matmul %34, %24, %cst_15 {dimension_numbers = #tpu.dot_dimension_numbers<[1], [0], [0], [1], [0, 0, 1, 1], [], []>} : vector<8x8xf32>, vector<8x8xf32>, vector<8x8xf32> -> vector<8x8xf32>
    %c0_16 = arith.constant 0 : index
    %c8 = arith.constant 8 : index
    %36 = vector.load %arg15[%c0_16, %c8] : memref<8x32xf32, #tpu.memory_space<vmem>>, vector<8x8xf32>
    tpu.vector_store %arg15[%c0_16, %c8], %35 {strides = array<i32>} : memref<8x32xf32, #tpu.memory_space<vmem>>, vector<8x8xf32>,
    %37 = vector.extract_strided_slice %6 {offsets = [0, 16], sizes = [8, 8], strides = [1, 1]} : vector<8x96xf32> to vector<8x8xf32>
    %38 = vector.extract_strided_slice %6 {offsets = [0, 48], sizes = [8, 8], strides = [1, 1]} : vector<8x96xf32> to vector<8x8xf32>
    %39 = vector.extract_strided_slice %6 {offsets = [0, 80], sizes = [8, 8], strides = [1, 1]} : vector<8x96xf32> to vector<8x8xf32>
    %cst_17 = arith.constant dense<0.000000e+00> : vector<8x8xf32>
    %40 = tpu.matmul %37, %38, %cst_17 {dimension_numbers = #tpu.dot_dimension_numbers<[1], [1], [0], [0], [0, 0, 1, 0], [], []>} : vector<8x8xf32>, vector<8x8xf32>, vector<8x8xf32> -> vector<8x8xf32>
    %cst_18 = arith.constant dense<0xFF800000> : vector<8xf32>
    %41 = vector.multi_reduction <maximumf>, %40, %cst_18 [1] : vector<8x8xf32> to vector<8xf32>
    %42 = vector.shape_cast %41 : vector<8xf32> to vector<8x1xf32>
    %43 = vector.broadcast %42 : vector<8x1xf32> to vector<8x8xf32>
    %44 = arith.subf %40, %43 : vector<8x8xf32>
    %45 = math.exp %44 : vector<8x8xf32>
    %cst_19 = arith.constant dense<0.000000e+00> : vector<8xf32>
    %46 = vector.multi_reduction <add>, %45, %cst_19 [1] : vector<8x8xf32> to vector<8xf32>
    %47 = vector.shape_cast %46 : vector<8xf32> to vector<8x1xf32>
    %48 = vector.broadcast %47 : vector<8x1xf32> to vector<8x8xf32>
    %49 = arith.divf %45, %48 : vector<8x8xf32>
    %cst_20 = arith.constant dense<0.000000e+00> : vector<8x8xf32>
    %50 = tpu.matmul %49, %39, %cst_20 {dimension_numbers = #tpu.dot_dimension_numbers<[1], [0], [0], [1], [0, 0, 1, 1], [], []>} : vector<8x8xf32>, vector<8x8xf32>, vector<8x8xf32> -> vector<8x8xf32>
    %c0_21 = arith.constant 0 : index
    %c16 = arith.constant 16 : index
    %51 = vector.load %arg15[%c0_21, %c16] : memref<8x32xf32, #tpu.memory_space<vmem>>, vector<8x8xf32>
    tpu.vector_store %arg15[%c0_21, %c16], %50 {strides = array<i32>} : memref<8x32xf32, #tpu.memory_space<vmem>>, vector<8x8xf32>,
    %52 = vector.extract_strided_slice %6 {offsets = [0, 24], sizes = [8, 8], strides = [1, 1]} : vector<8x96xf32> to vector<8x8xf32>
    %53 = vector.extract_strided_slice %6 {offsets = [0, 56], sizes = [8, 8], strides = [1, 1]} : vector<8x96xf32> to vector<8x8xf32>
    %54 = vector.extract_strided_slice %6 {offsets = [0, 88], sizes = [8, 8], strides = [1, 1]} : vector<8x96xf32> to vector<8x8xf32>
    %cst_22 = arith.constant dense<0.000000e+00> : vector<8x8xf32>
    %55 = tpu.matmul %52, %53, %cst_22 {dimension_numbers = #tpu.dot_dimension_numbers<[1], [1], [0], [0], [0, 0, 1, 0], [], []>} : vector<8x8xf32>, vector<8x8xf32>, vector<8x8xf32> -> vector<8x8xf32>
    %cst_23 = arith.constant dense<0xFF800000> : vector<8xf32>
    %56 = vector.multi_reduction <maximumf>, %55, %cst_23 [1] : vector<8x8xf32> to vector<8xf32>
    %57 = vector.shape_cast %56 : vector<8xf32> to vector<8x1xf32>
    %58 = vector.broadcast %57 : vector<8x1xf32> to vector<8x8xf32>
    %59 = arith.subf %55, %58 : vector<8x8xf32>
    %60 = math.exp %59 : vector<8x8xf32>
    %cst_24 = arith.constant dense<0.000000e+00> : vector<8xf32>
    %61 = vector.multi_reduction <add>, %60, %cst_24 [1] : vector<8x8xf32> to vector<8xf32>
    %62 = vector.shape_cast %61 : vector<8xf32> to vector<8x1xf32>
    %63 = vector.broadcast %62 : vector<8x1xf32> to vector<8x8xf32>
    %64 = arith.divf %60, %63 : vector<8x8xf32>
    %cst_25 = arith.constant dense<0.000000e+00> : vector<8x8xf32>
    %65 = tpu.matmul %64, %54, %cst_25 {dimension_numbers = #tpu.dot_dimension_numbers<[1], [0], [0], [1], [0, 0, 1, 1], [], []>} : vector<8x8xf32>, vector<8x8xf32>, vector<8x8xf32> -> vector<8x8xf32>
    %c0_26 = arith.constant 0 : index
    %c24 = arith.constant 24 : index
    %66 = vector.load %arg15[%c0_26, %c24] : memref<8x32xf32, #tpu.memory_space<vmem>>, vector<8x8xf32>
    tpu.vector_store %arg15[%c0_26, %c24], %65 {strides = array<i32>} : memref<8x32xf32, #tpu.memory_space<vmem>>, vector<8x8xf32>,
    %c0_27 = arith.constant 0 : index
    %c0_28 = arith.constant 0 : index
    %67 = vector.load %arg15[%c0_27, %c0_28] : memref<8x32xf32, #tpu.memory_space<vmem>>, vector<8x32xf32>
    %c0_29 = arith.constant 0 : index
    %c0_30 = arith.constant 0 : index
    %68 = vector.load %arg4[%c0_29, %c0_30] : memref<32x32xf32, #tpu.memory_space<vmem>>, vector<32x32xf32>
    %cst_31 = arith.constant dense<0.000000e+00> : vector<8x32xf32>
    %69 = tpu.matmul %67, %68, %cst_31 {dimension_numbers = #tpu.dot_dimension_numbers<[1], [0], [0], [1], [0, 0, 1, 1], [], []>} : vector<8x32xf32>, vector<32x32xf32>, vector<8x32xf32> -> vector<8x32xf32>
    %c0_32 = arith.constant 0 : index
    %c0_33 = arith.constant 0 : index
    %70 = vector.load %arg5[%c0_32, %c0_33] : memref<1x32xf32, #tpu.memory_space<vmem>>, vector<1x32xf32>
    %71 = vector.broadcast %70 : vector<1x32xf32> to vector<8x32xf32>
    %72 = arith.addf %69, %71 : vector<8x32xf32>
    %73 = arith.addf %1, %72 : vector<8x32xf32>
    %cst_34 = arith.constant dense<0.000000e+00> : vector<8xf32>
    %74 = vector.multi_reduction <add>, %73, %cst_34 [1] : vector<8x32xf32> to vector<8xf32>
    %75 = vector.shape_cast %74 : vector<8xf32> to vector<8x1xf32>
    %cst_35 = arith.constant 3.200000e+01 : f32
    %76 = vector.broadcast %cst_35 : f32 to vector<8x1xf32>
    %77 = arith.divf %75, %76 : vector<8x1xf32>
    %78 = vector.broadcast %77 : vector<8x1xf32> to vector<8x32xf32>
    %79 = arith.subf %73, %78 : vector<8x32xf32>
    %80 = vector.broadcast %77 : vector<8x1xf32> to vector<8x32xf32>
    %81 = arith.subf %73, %80 : vector<8x32xf32>
    %82 = arith.mulf %79, %81 : vector<8x32xf32>
    %cst_36 = arith.constant dense<0.000000e+00> : vector<8xf32>
    %83 = vector.multi_reduction <add>, %82, %cst_36 [1] : vector<8x32xf32> to vector<8xf32>
    %84 = vector.shape_cast %83 : vector<8xf32> to vector<8x1xf32>
    %cst_37 = arith.constant 3.200000e+01 : f32
    %85 = vector.broadcast %cst_37 : f32 to vector<8x1xf32>
    %86 = arith.divf %84, %85 : vector<8x1xf32>
    %87 = vector.broadcast %77 : vector<8x1xf32> to vector<8x32xf32>
    %88 = arith.subf %73, %87 : vector<8x32xf32>
    %cst_38 = arith.constant 9.99999974E-6 : f32
    %89 = vector.broadcast %cst_38 : f32 to vector<8x1xf32>
    %90 = arith.addf %86, %89 : vector<8x1xf32>
    %91 = math.rsqrt %90 : vector<8x1xf32>
    %92 = vector.broadcast %91 : vector<8x1xf32> to vector<8x32xf32>
    %93 = arith.mulf %88, %92 : vector<8x32xf32>
    %c0_39 = arith.constant 0 : index
    %c0_40 = arith.constant 0 : index
    %94 = vector.load %arg10[%c0_39, %c0_40] : memref<1x32xf32, #tpu.memory_space<vmem>>, vector<1x32xf32>
    %95 = vector.broadcast %94 : vector<1x32xf32> to vector<8x32xf32>
    %96 = arith.mulf %93, %95 : vector<8x32xf32>
    %c0_41 = arith.constant 0 : index
    %c0_42 = arith.constant 0 : index
    %97 = vector.load %arg11[%c0_41, %c0_42] : memref<1x32xf32, #tpu.memory_space<vmem>>, vector<1x32xf32>
    %98 = vector.broadcast %97 : vector<1x32xf32> to vector<8x32xf32>
    %99 = arith.addf %96, %98 : vector<8x32xf32>
    %c0_43 = arith.constant 0 : index
    %c0_44 = arith.constant 0 : index
    %100 = vector.load %arg6[%c0_43, %c0_44] : memref<32x64xf32, #tpu.memory_space<vmem>>, vector<32x64xf32>
    %cst_45 = arith.constant dense<0.000000e+00> : vector<8x64xf32>
    %101 = tpu.matmul %99, %100, %cst_45 {dimension_numbers = #tpu.dot_dimension_numbers<[1], [0], [0], [1], [0, 0, 1, 1], [], []>} : vector<8x32xf32>, vector<32x64xf32>, vector<8x64xf32> -> vector<8x64xf32>
    %c0_46 = arith.constant 0 : index
    %c0_47 = arith.constant 0 : index
    %102 = vector.load %arg7[%c0_46, %c0_47] : memref<1x64xf32, #tpu.memory_space<vmem>>, vector<1x64xf32>
    %103 = vector.broadcast %102 : vector<1x64xf32> to vector<8x64xf32>
    %104 = arith.addf %101, %103 : vector<8x64xf32>
    %cst_48 = arith.constant 0.000000e+00 : f32
    %105 = vector.broadcast %cst_48 : f32 to vector<8x64xf32>
    %106 = arith.maximumf %104, %105 : vector<8x64xf32>
    %c0_49 = arith.constant 0 : index
    %c0_50 = arith.constant 0 : index
    %107 = vector.load %arg8[%c0_49, %c0_50] : memref<64x32xf32, #tpu.memory_space<vmem>>, vector<64x32xf32>
    %cst_51 = arith.constant dense<0.000000e+00> : vector<8x32xf32>
    %108 = tpu.matmul %106, %107, %cst_51 {dimension_numbers = #tpu.dot_dimension_numbers<[1], [0], [0], [1], [0, 0, 1, 1], [], []>} : vector<8x64xf32>, vector<64x32xf32>, vector<8x32xf32> -> vector<8x32xf32>
    %c0_52 = arith.constant 0 : index
    %c0_53 = arith.constant 0 : index
    %109 = vector.load %arg9[%c0_52, %c0_53] : memref<1x32xf32, #tpu.memory_space<vmem>>, vector<1x32xf32>
    %110 = vector.broadcast %109 : vector<1x32xf32> to vector<8x32xf32>
    %111 = arith.addf %108, %110 : vector<8x32xf32>
    %112 = arith.addf %99, %111 : vector<8x32xf32>
    %cst_54 = arith.constant dense<0.000000e+00> : vector<8xf32>
    %113 = vector.multi_reduction <add>, %112, %cst_54 [1] : vector<8x32xf32> to vector<8xf32>
    %114 = vector.shape_cast %113 : vector<8xf32> to vector<8x1xf32>
    %cst_55 = arith.constant 3.200000e+01 : f32
    %115 = vector.broadcast %cst_55 : f32 to vector<8x1xf32>
    %116 = arith.divf %114, %115 : vector<8x1xf32>
    %117 = vector.broadcast %116 : vector<8x1xf32> to vector<8x32xf32>
    %118 = arith.subf %112, %117 : vector<8x32xf32>
    %119 = vector.broadcast %116 : vector<8x1xf32> to vector<8x32xf32>
    %120 = arith.subf %112, %119 : vector<8x32xf32>
    %121 = arith.mulf %118, %120 : vector<8x32xf32>
    %cst_56 = arith.constant dense<0.000000e+00> : vector<8xf32>
    %122 = vector.multi_reduction <add>, %121, %cst_56 [1] : vector<8x32xf32> to vector<8xf32>
    %123 = vector.shape_cast %122 : vector<8xf32> to vector<8x1xf32>
    %cst_57 = arith.constant 3.200000e+01 : f32
    %124 = vector.broadcast %cst_57 : f32 to vector<8x1xf32>
    %125 = arith.divf %123, %124 : vector<8x1xf32>
    %126 = vector.broadcast %116 : vector<8x1xf32> to vector<8x32xf32>
    %127 = arith.subf %112, %126 : vector<8x32xf32>
    %cst_58 = arith.constant 9.99999974E-6 : f32
    %128 = vector.broadcast %cst_58 : f32 to vector<8x1xf32>
    %129 = arith.addf %125, %128 : vector<8x1xf32>
    %130 = math.rsqrt %129 : vector<8x1xf32>
    %131 = vector.broadcast %130 : vector<8x1xf32> to vector<8x32xf32>
    %132 = arith.mulf %127, %131 : vector<8x32xf32>
    %c0_59 = arith.constant 0 : index
    %c0_60 = arith.constant 0 : index
    %133 = vector.load %arg12[%c0_59, %c0_60] : memref<1x32xf32, #tpu.memory_space<vmem>>, vector<1x32xf32>
    %134 = vector.broadcast %133 : vector<1x32xf32> to vector<8x32xf32>
    %135 = arith.mulf %132, %134 : vector<8x32xf32>
    %c0_61 = arith.constant 0 : index
    %c0_62 = arith.constant 0 : index
    %136 = vector.load %arg13[%c0_61, %c0_62] : memref<1x32xf32, #tpu.memory_space<vmem>>, vector<1x32xf32>
    %137 = vector.broadcast %136 : vector<1x32xf32> to vector<8x32xf32>
    %138 = arith.addf %135, %137 : vector<8x32xf32>
    %c0_63 = arith.constant 0 : index
    %c0_64 = arith.constant 0 : index
    %c0_65 = arith.constant 0 : index
    %139 = vector.load %arg14[%c0_63, %c0_64, %c0_65] : memref<1x8x32xf32, #tpu.memory_space<vmem>>, vector<1x8x32xf32>
    %140 = vector.shape_cast %139 : vector<1x8x32xf32> to vector<8x32xf32>
    %141 = vector.shape_cast %138 : vector<8x32xf32> to vector<1x8x32xf32>
    tpu.vector_store %arg14[%c0_63, %c0_64, %c0_65], %141 {strides = array<i32>} : memref<1x8x32xf32, #tpu.memory_space<vmem>>, vector<1x8x32xf32>,
    return
  }
  func.func @transform_0(%arg0: i32) -> (i32, i32, i32) {
    %c0_i32 = arith.constant 0 : i32
    %c0_i32_0 = arith.constant 0 : i32
    %c0_i32_1 = arith.constant 0 : i32
    return %arg0, %c0_i32, %c0_i32_0 : i32, i32, i32
  }
  func.func @transform_1(%arg0: i32) -> (i32, i32) {
    %c0_i32 = arith.constant 0 : i32
    %c0_i32_0 = arith.constant 0 : i32
    %c0_i32_1 = arith.constant 0 : i32
    return %c0_i32, %c0_i32_0 : i32, i32
  }
  func.func @transform_2(%arg0: i32) -> (i32, i32) {
    %c0_i32 = arith.constant 0 : i32
    %c0_i32_0 = arith.constant 0 : i32
    %c0_i32_1 = arith.constant 0 : i32
    return %c0_i32, %c0_i32_0 : i32, i32
  }
  func.func @transform_3(%arg0: i32) -> (i32, i32) {
    %c0_i32 = arith.constant 0 : i32
    %c0_i32_0 = arith.constant 0 : i32
    %c0_i32_1 = arith.constant 0 : i32
    return %c0_i32, %c0_i32_0 : i32, i32
  }
  func.func @transform_4(%arg0: i32) -> (i32, i32) {
    %c0_i32 = arith.constant 0 : i32
    %c0_i32_0 = arith.constant 0 : i32
    %c0_i32_1 = arith.constant 0 : i32
    return %c0_i32, %c0_i32_0 : i32, i32
  }
  func.func @transform_5(%arg0: i32) -> (i32, i32) {
    %c0_i32 = arith.constant 0 : i32
    %c0_i32_0 = arith.constant 0 : i32
    %c0_i32_1 = arith.constant 0 : i32
    return %c0_i32, %c0_i32_0 : i32, i32
  }
  func.func @transform_6(%arg0: i32) -> (i32, i32) {
    %c0_i32 = arith.constant 0 : i32
    %c0_i32_0 = arith.constant 0 : i32
    %c0_i32_1 = arith.constant 0 : i32
    return %c0_i32, %c0_i32_0 : i32, i32
  }
  func.func @transform_7(%arg0: i32) -> (i32, i32) {
    %c0_i32 = arith.constant 0 : i32
    %c0_i32_0 = arith.constant 0 : i32
    %c0_i32_1 = arith.constant 0 : i32
    return %c0_i32, %c0_i32_0 : i32, i32
  }
  func.func @transform_8(%arg0: i32) -> (i32, i32) {
    %c0_i32 = arith.constant 0 : i32
    %c0_i32_0 = arith.constant 0 : i32
    %c0_i32_1 = arith.constant 0 : i32
    return %c0_i32, %c0_i32_0 : i32, i32
  }
  func.func @transform_9(%arg0: i32) -> (i32, i32) {
    %c0_i32 = arith.constant 0 : i32
    %c0_i32_0 = arith.constant 0 : i32
    %c0_i32_1 = arith.constant 0 : i32
    return %c0_i32, %c0_i32_0 : i32, i32
  }
  func.func @transform_10(%arg0: i32) -> (i32, i32) {
    %c0_i32 = arith.constant 0 : i32
    %c0_i32_0 = arith.constant 0 : i32
    %c0_i32_1 = arith.constant 0 : i32
    return %c0_i32, %c0_i32_0 : i32, i32
  }
  func.func @transform_11(%arg0: i32) -> (i32, i32) {
    %c0_i32 = arith.constant 0 : i32
    %c0_i32_0 = arith.constant 0 : i32
    %c0_i32_1 = arith.constant 0 : i32
    return %c0_i32, %c0_i32_0 : i32, i32
  }
  func.func @transform_12(%arg0: i32) -> (i32, i32) {
    %c0_i32 = arith.constant 0 : i32
    %c0_i32_0 = arith.constant 0 : i32
    %c0_i32_1 = arith.constant 0 : i32
    return %c0_i32, %c0_i32_0 : i32, i32
  }
  func.func @transform_13(%arg0: i32) -> (i32, i32, i32) {
    %c0_i32 = arith.constant 0 : i32
    %c0_i32_0 = arith.constant 0 : i32
    %c0_i32_1 = arith.constant 0 : i32
    return %arg0, %c0_i32, %c0_i32_0 : i32, i32, i32
  }
}

module attributes {stable_mosaic.version = 11 : i64} {
  func.func @_encoder_kernel(%arg0: i32, %arg1: memref<1x8x32xf32, #tpu.memory_space<vmem>>, %arg2: memref<32x96xf32, #tpu.memory_space<vmem>>, %arg3: memref<1x96xf32, #tpu.memory_space<vmem>>, %arg4: memref<32x32xf32, #tpu.memory_space<vmem>>, %arg5: memref<1x32xf32, #tpu.memory_space<vmem>>, %arg6: memref<32x64xf32, #tpu.memory_space<vmem>>, %arg7: memref<1x64xf32, #tpu.memory_space<vmem>>, %arg8: memref<64x32xf32, #tpu.memory_space<vmem>>, %arg9: memref<1x32xf32, #tpu.memory_space<vmem>>, %arg10: memref<1x32xf32, #tpu.memory_space<vmem>>, %arg11: memref<1x32xf32, #tpu.memory_space<vmem>>, %arg12: memref<1x32xf32, #tpu.memory_space<vmem>>, %arg13: memref<1x32xf32, #tpu.memory_space<vmem>>, %arg14: memref<1x8x32xf32, #tpu.memory_space<vmem>>, %arg15: memref<8x32xf32, #tpu.memory_space<vmem>>) attributes {dimension_semantics = [#tpu.dimension_semantics<parallel>], iteration_bounds = array<i64: 2>, scalar_prefetch = 0 : i64, scratch_operands = 1 : i64, tpu.core_type = #tpu.core_type<tc>, window_params = [{transform_indices = @transform_0, window_bounds = array<i64: 1, 8, 32>}, {pipeline_mode = #tpu.pipeline_mode<synchronous>, transform_indices = @transform_1, window_bounds = array<i64: 32, 96>}, {pipeline_mode = #tpu.pipeline_mode<synchronous>, transform_indices = @transform_2, window_bounds = array<i64: 1, 96>}, {pipeline_mode = #tpu.pipeline_mode<synchronous>, transform_indices = @transform_3, window_bounds = array<i64: 32, 32>}, {pipeline_mode = #tpu.pipeline_mode<synchronous>, transform_indices = @transform_4, window_bounds = array<i64: 1, 32>}, {pipeline_mode = #tpu.pipeline_mode<synchronous>, transform_indices = @transform_5, window_bounds = array<i64: 32, 64>}, {pipeline_mode = #tpu.pipeline_mode<synchronous>, transform_indices = @transform_6, window_bounds = array<i64: 1, 64>}, {pipeline_mode = #tpu.pipeline_mode<synchronous>, transform_indices = @transform_7, window_bounds = array<i64: 64, 32>}, {pipeline_mode = #tpu.pipeline_mode<synchronous>, transform_indices = @transform_8, window_bounds = array<i64: 1, 32>}, {pipeline_mode = #tpu.pipeline_mode<synchronous>, transform_indices = @transform_9, window_bounds = array<i64: 1, 32>}, {pipeline_mode = #tpu.pipeline_mode<synchronous>, transform_indices = @transform_10, window_bounds = array<i64: 1, 32>}, {pipeline_mode = #tpu.pipeline_mode<synchronous>, transform_indices = @transform_11, window_bounds = array<i64: 1, 32>}, {pipeline_mode = #tpu.pipeline_mode<synchronous>, transform_indices = @transform_12, window_bounds = array<i64: 1, 32>}, {transform_indices = @transform_13, window_bounds = array<i64: 1, 8, 32>}]} {
    %c0 = arith.constant 0 : index
    %c0_0 = arith.constant 0 : index
    %c0_1 = arith.constant 0 : index
    %0 = vector.load %arg1[%c0, %c0_0, %c0_1] : memref<1x8x32xf32, #tpu.memory_space<vmem>>, vector<1x8x32xf32>
    %1 = vector.shape_cast %0 : vector<1x8x32xf32> to vector<8x32xf32>
    %c0_2 = arith.constant 0 : index
    %c0_3 = arith.constant 0 : index
    %2 = vector.load %arg2[%c0_2, %c0_3] : memref<32x96xf32, #tpu.memory_space<vmem>>, vector<32x96xf32>
    %cst = arith.constant dense<0.000000e+00> : vector<8x96xf32>
    %3 = tpu.matmul %1, %2, %cst {dimension_numbers = #tpu.dot_dimension_numbers<[1], [0], [0], [1], [0, 0, 1, 1], [], []>} : vector<8x32xf32>, vector<32x96xf32>, vector<8x96xf32> -> vector<8x96xf32>
    %c0_4 = arith.constant 0 : index
    %c0_5 = arith.constant 0 : index
    %4 = vector.load %arg3[%c0_4, %c0_5] : memref<1x96xf32, #tpu.memory_space<vmem>>, vector<1x96xf32>
    %5 = vector.broadcast %4 : vector<1x96xf32> to vector<8x96xf32>
    %6 = arith.addf %3, %5 : vector<8x96xf32>
    %7 = vector.extract_strided_slice %6 {offsets = [0, 0], sizes = [8, 8], strides = [1, 1]} : vector<8x96xf32> to vector<8x8xf32>
    %8 = vector.extract_strided_slice %6 {offsets = [0, 32], sizes = [8, 8], strides = [1, 1]} : vector<8x96xf32> to vector<8x8xf32>
    %9 = vector.extract_strided_slice %6 {offsets = [0, 64], sizes = [8, 8], strides = [1, 1]} : vector<8x96xf32> to vector<8x8xf32>
    %cst_6 = arith.constant dense<0.000000e+00> : vector<8x8xf32>
    %10 = tpu.matmul %7, %8, %cst_6 {dimension_numbers = #tpu.dot_dimension_numbers<[1], [1], [0], [0], [0, 0, 1, 0], [], []>} : vector<8x8xf32>, vector<8x8xf32>, vector<8x8xf32> -> vector<8x8xf32>
    %cst_7 = arith.constant dense<0xFF800000> : vector<8xf32>
    %11 = vector.multi_reduction <maximumf>, %10, %cst_7 [1] : vector<8x8xf32> to vector<8xf32>
    %12 = vector.shape_cast %11 : vector<8xf32> to vector<8x1xf32>
    %13 = vector.broadcast %12 : vector<8x1xf32> to vector<8x8xf32>
    %14 = arith.subf %10, %13 : vector<8x8xf32>
    %15 = math.exp %14 : vector<8x8xf32>
    %cst_8 = arith.constant dense<0.000000e+00> : vector<8xf32>
    %16 = vector.multi_reduction <add>, %15, %cst_8 [1] : vector<8x8xf32> to vector<8xf32>
    %17 = vector.shape_cast %16 : vector<8xf32> to vector<8x1xf32>
    %18 = vector.broadcast %17 : vector<8x1xf32> to vector<8x8xf32>
    %19 = arith.divf %15, %18 : vector<8x8xf32>
    %cst_9 = arith.constant dense<0.000000e+00> : vector<8x8xf32>
    %20 = tpu.matmul %19, %9, %cst_9 {dimension_numbers = #tpu.dot_dimension_numbers<[1], [0], [0], [1], [0, 0, 1, 1], [], []>} : vector<8x8xf32>, vector<8x8xf32>, vector<8x8xf32> -> vector<8x8xf32>
    %c0_10 = arith.constant 0 : index
    %c0_11 = arith.constant 0 : index
    %21 = vector.load %arg15[%c0_10, %c0_11] : memref<8x32xf32, #tpu.memory_space<vmem>>, vector<8x8xf32>
    tpu.vector_store %arg15[%c0_10, %c0_11], %20 {strides = array<i32>} : memref<8x32xf32, #tpu.memory_space<vmem>>, vector<8x8xf32>,
    %22 = vector.extract_strided_slice %6 {offsets = [0, 8], sizes = [8, 8], strides = [1, 1]} : vector<8x96xf32> to vector<8x8xf32>
    %23 = vector.extract_strided_slice %6 {offsets = [0, 40], sizes = [8, 8], strides = [1, 1]} : vector<8x96xf32> to vector<8x8xf32>
    %24 = vector.extract_strided_slice %6 {offsets = [0, 72], sizes = [8, 8], strides = [1, 1]} : vector<8x96xf32> to vector<8x8xf32>
    %cst_12 = arith.constant dense<0.000000e+00> : vector<8x8xf32>
    %25 = tpu.matmul %22, %23, %cst_12 {dimension_numbers = #tpu.dot_dimension_numbers<[1], [1], [0], [0], [0, 0, 1, 0], [], []>} : vector<8x8xf32>, vector<8x8xf32>, vector<8x8xf32> -> vector<8x8xf32>
    %cst_13 = arith.constant dense<0xFF800000> : vector<8xf32>
    %26 = vector.multi_reduction <maximumf>, %25, %cst_13 [1] : vector<8x8xf32> to vector<8xf32>
    %27 = vector.shape_cast %26 : vector<8xf32> to vector<8x1xf32>
    %28 = vector.broadcast %27 : vector<8x1xf32> to vector<8x8xf32>
    %29 = arith.subf %25, %28 : vector<8x8xf32>
    %30 = math.exp %29 : vector<8x8xf32>
    %cst_14 = arith.constant dense<0.000000e+00> : vector<8xf32>
    %31 = vector.multi_reduction <add>, %30, %cst_14 [1] : vector<8x8xf32> to vector<8xf32>
    %32 = vector.shape_cast %31 : vector<8xf32> to vector<8x1xf32>
    %33 = vector.broadcast %32 : vector<8x1xf32> to vector<8x8xf32>
    %34 = arith.divf %30, %33 : vector<8x8xf32>
    %cst_15 = arith.constant dense<0.000000e+00> : vector<8x8xf32>
    %35 = tpu.matmul %34, %24, %cst_15 {dimension_numbers = #tpu.dot_dimension_numbers<[1], [0], [0], [1], [0, 0, 1, 1], [], []>} : vector<8x8xf32>, vector<8x8xf32>, vector<8x8xf32> -> vector<8x8xf32>
    %c0_16 = arith.constant 0 : index
    %c8 = arith.constant 8 : index
    %36 = vector.load %arg15[%c0_16, %c8] : memref<8x32xf32, #tpu.memory_space<vmem>>, vector<8x8xf32>
    tpu.vector_store %arg15[%c0_16, %c8], %35 {strides = array<i32>} : memref<8x32xf32, #tpu.memory_space<vmem>>, vector<8x8xf32>,
    %37 = vector.extract_strided_slice %6 {offsets = [0, 16], sizes = [8, 8], strides = [1, 1]} : vector<8x96xf32> to vector<8x8xf32>
    %38 = vector.extract_strided_slice %6 {offsets = [0, 48], sizes = [8, 8], strides = [1, 1]} : vector<8x96xf32> to vector<8x8xf32>
    %39 = vector.extract_strided_slice %6 {offsets = [0, 80], sizes = [8, 8], strides = [1, 1]} : vector<8x96xf32> to vector<8x8xf32>
    %cst_17 = arith.constant dense<0.000000e+00> : vector<8x8xf32>
    %40 = tpu.matmul %37, %38, %cst_17 {dimension_numbers = #tpu.dot_dimension_numbers<[1], [1], [0], [0], [0, 0, 1, 0], [], []>} : vector<8x8xf32>, vector<8x8xf32>, vector<8x8xf32> -> vector<8x8xf32>
    %cst_18 = arith.constant dense<0xFF800000> : vector<8xf32>
    %41 = vector.multi_reduction <maximumf>, %40, %cst_18 [1] : vector<8x8xf32> to vector<8xf32>
    %42 = vector.shape_cast %41 : vector<8xf32> to vector<8x1xf32>
    %43 = vector.broadcast %42 : vector<8x1xf32> to vector<8x8xf32>
    %44 = arith.subf %40, %43 : vector<8x8xf32>
    %45 = math.exp %44 : vector<8x8xf32>
    %cst_19 = arith.constant dense<0.000000e+00> : vector<8xf32>
    %46 = vector.multi_reduction <add>, %45, %cst_19 [1] : vector<8x8xf32> to vector<8xf32>
    %47 = vector.shape_cast %46 : vector<8xf32> to vector<8x1xf32>
    %48 = vector.broadcast %47 : vector<8x1xf32> to vector<8x8xf32>
    %49 = arith.divf %45, %48 : vector<8x8xf32>
    %cst_20 = arith.constant dense<0.000000e+00> : vector<8x8xf32>
    %50 = tpu.matmul %49, %39, %cst_20 {dimension_numbers = #tpu.dot_dimension_numbers<[1], [0], [0], [1], [0, 0, 1, 1], [], []>} : vector<8x8xf32>, vector<8x8xf32>, vector<8x8xf32> -> vector<8x8xf32>
    %c0_21 = arith.constant 0 : index
    %c16 = arith.constant 16 : index
    %51 = vector.load %arg15[%c0_21, %c16] : memref<8x32xf32, #tpu.memory_space<vmem>>, vector<8x8xf32>
    tpu.vector_store %arg15[%c0_21, %c16], %50 {strides = array<i32>} : memref<8x32xf32, #tpu.memory_space<vmem>>, vector<8x8xf32>,
    %52 = vector.extract_strided_slice %6 {offsets = [0, 24], sizes = [8, 8], strides = [1, 1]} : vector<8x96xf32> to vector<8x8xf32>
    %53 = vector.extract_strided_slice %6 {offsets = [0, 56], sizes = [8, 8], strides = [1, 1]} : vector<8x96xf32> to vector<8x8xf32>
    %54 = vector.extract_strided_slice %6 {offsets = [0, 88], sizes = [8, 8], strides = [1, 1]} : vector<8x96xf32> to vector<8x8xf32>
    %cst_22 = arith.constant dense<0.000000e+00> : vector<8x8xf32>
    %55 = tpu.matmul %52, %53, %cst_22 {dimension_numbers = #tpu.dot_dimension_numbers<[1], [1], [0], [0], [0, 0, 1, 0], [], []>} : vector<8x8xf32>, vector<8x8xf32>, vector<8x8xf32> -> vector<8x8xf32>
    %cst_23 = arith.constant dense<0xFF800000> : vector<8xf32>
    %56 = vector.multi_reduction <maximumf>, %55, %cst_23 [1] : vector<8x8xf32> to vector<8xf32>
    %57 = vector.shape_cast %56 : vector<8xf32> to vector<8x1xf32>
    %58 = vector.broadcast %57 : vector<8x1xf32> to vector<8x8xf32>
    %59 = arith.subf %55, %58 : vector<8x8xf32>
    %60 = math.exp %59 : vector<8x8xf32>
    %cst_24 = arith.constant dense<0.000000e+00> : vector<8xf32>
    %61 = vector.multi_reduction <add>, %60, %cst_24 [1] : vector<8x8xf32> to vector<8xf32>
    %62 = vector.shape_cast %61 : vector<8xf32> to vector<8x1xf32>
    %63 = vector.broadcast %62 : vector<8x1xf32> to vector<8x8xf32>
    %64 = arith.divf %60, %63 : vector<8x8xf32>
    %cst_25 = arith.constant dense<0.000000e+00> : vector<8x8xf32>
    %65 = tpu.matmul %64, %54, %cst_25 {dimension_numbers = #tpu.dot_dimension_numbers<[1], [0], [0], [1], [0, 0, 1, 1], [], []>} : vector<8x8xf32>, vector<8x8xf32>, vector<8x8xf32> -> vector<8x8xf32>
    %c0_26 = arith.constant 0 : index
    %c24 = arith.constant 24 : index
    %66 = vector.load %arg15[%c0_26, %c24] : memref<8x32xf32, #tpu.memory_space<vmem>>, vector<8x8xf32>
    tpu.vector_store %arg15[%c0_26, %c24], %65 {strides = array<i32>} : memref<8x32xf32, #tpu.memory_space<vmem>>, vector<8x8xf32>,
    %c0_27 = arith.constant 0 : index
    %c0_28 = arith.constant 0 : index
    %67 = vector.load %arg15[%c0_27, %c0_28] : memref<8x32xf32, #tpu.memory_space<vmem>>, vector<8x32xf32>
    %c0_29 = arith.constant 0 : index
    %c0_30 = arith.constant 0 : index
    %68 = vector.load %arg4[%c0_29, %c0_30] : memref<32x32xf32, #tpu.memory_space<vmem>>, vector<32x32xf32>
    %cst_31 = arith.constant dense<0.000000e+00> : vector<8x32xf32>
    %69 = tpu.matmul %67, %68, %cst_31 {dimension_numbers = #tpu.dot_dimension_numbers<[1], [0], [0], [1], [0, 0, 1, 1], [], []>} : vector<8x32xf32>, vector<32x32xf32>, vector<8x32xf32> -> vector<8x32xf32>
    %c0_32 = arith.constant 0 : index
    %c0_33 = arith.constant 0 : index
    %70 = vector.load %arg5[%c0_32, %c0_33] : memref<1x32xf32, #tpu.memory_space<vmem>>, vector<1x32xf32>
    %71 = vector.broadcast %70 : vector<1x32xf32> to vector<8x32xf32>
    %72 = arith.addf %69, %71 : vector<8x32xf32>
    %73 = arith.addf %1, %72 : vector<8x32xf32>
    %cst_34 = arith.constant dense<0.000000e+00> : vector<8xf32>
    %74 = vector.multi_reduction <add>, %73, %cst_34 [1] : vector<8x32xf32> to vector<8xf32>
    %75 = vector.shape_cast %74 : vector<8xf32> to vector<8x1xf32>
    %cst_35 = arith.constant 3.200000e+01 : f32
    %76 = vector.broadcast %cst_35 : f32 to vector<8x1xf32>
    %77 = arith.divf %75, %76 : vector<8x1xf32>
    %78 = vector.broadcast %77 : vector<8x1xf32> to vector<8x32xf32>
    %79 = arith.subf %73, %78 : vector<8x32xf32>
    %80 = vector.broadcast %77 : vector<8x1xf32> to vector<8x32xf32>
    %81 = arith.subf %73, %80 : vector<8x32xf32>
    %82 = arith.mulf %79, %81 : vector<8x32xf32>
    %cst_36 = arith.constant dense<0.000000e+00> : vector<8xf32>
    %83 = vector.multi_reduction <add>, %82, %cst_36 [1] : vector<8x32xf32> to vector<8xf32>
    %84 = vector.shape_cast %83 : vector<8xf32> to vector<8x1xf32>
    %cst_37 = arith.constant 3.200000e+01 : f32
    %85 = vector.broadcast %cst_37 : f32 to vector<8x1xf32>
    %86 = arith.divf %84, %85 : vector<8x1xf32>
    %87 = vector.broadcast %77 : vector<8x1xf32> to vector<8x32xf32>
    %88 = arith.subf %73, %87 : vector<8x32xf32>
    %cst_38 = arith.constant 9.99999974E-6 : f32
    %89 = vector.broadcast %cst_38 : f32 to vector<8x1xf32>
    %90 = arith.addf %86, %89 : vector<8x1xf32>
    %91 = math.rsqrt %90 : vector<8x1xf32>
    %92 = vector.broadcast %91 : vector<8x1xf32> to vector<8x32xf32>
    %93 = arith.mulf %88, %92 : vector<8x32xf32>
    %c0_39 = arith.constant 0 : index
    %c0_40 = arith.constant 0 : index
    %94 = vector.load %arg10[%c0_39, %c0_40] : memref<1x32xf32, #tpu.memory_space<vmem>>, vector<1x32xf32>
    %95 = vector.broadcast %94 : vector<1x32xf32> to vector<8x32xf32>
    %96 = arith.mulf %93, %95 : vector<8x32xf32>
    %c0_41 = arith.constant 0 : index
    %c0_42 = arith.constant 0 : index
    %97 = vector.load %arg11[%c0_41, %c0_42] : memref<1x32xf32, #tpu.memory_space<vmem>>, vector<1x32xf32>
    %98 = vector.broadcast %97 : vector<1x32xf32> to vector<8x32xf32>
    %99 = arith.addf %96, %98 : vector<8x32xf32>
    %c0_43 = arith.constant 0 : index
    %c0_44 = arith.constant 0 : index
    %100 = vector.load %arg6[%c0_43, %c0_44] : memref<32x64xf32, #tpu.memory_space<vmem>>, vector<32x64xf32>
    %cst_45 = arith.constant dense<0.000000e+00> : vector<8x64xf32>
    %101 = tpu.matmul %99, %100, %cst_45 {dimension_numbers = #tpu.dot_dimension_numbers<[1], [0], [0], [1], [0, 0, 1, 1], [], []>} : vector<8x32xf32>, vector<32x64xf32>, vector<8x64xf32> -> vector<8x64xf32>
    %c0_46 = arith.constant 0 : index
    %c0_47 = arith.constant 0 : index
    %102 = vector.load %arg7[%c0_46, %c0_47] : memref<1x64xf32, #tpu.memory_space<vmem>>, vector<1x64xf32>
    %103 = vector.broadcast %102 : vector<1x64xf32> to vector<8x64xf32>
    %104 = arith.addf %101, %103 : vector<8x64xf32>
    %cst_48 = arith.constant 0.000000e+00 : f32
    %105 = vector.broadcast %cst_48 : f32 to vector<8x64xf32>
    %106 = arith.maximumf %104, %105 : vector<8x64xf32>
    %c0_49 = arith.constant 0 : index
    %c0_50 = arith.constant 0 : index
    %107 = vector.load %arg8[%c0_49, %c0_50] : memref<64x32xf32, #tpu.memory_space<vmem>>, vector<64x32xf32>
    %cst_51 = arith.constant dense<0.000000e+00> : vector<8x32xf32>
    %108 = tpu.matmul %106, %107, %cst_51 {dimension_numbers = #tpu.dot_dimension_numbers<[1], [0], [0], [1], [0, 0, 1, 1], [], []>} : vector<8x64xf32>, vector<64x32xf32>, vector<8x32xf32> -> vector<8x32xf32>
    %c0_52 = arith.constant 0 : index
    %c0_53 = arith.constant 0 : index
    %109 = vector.load %arg9[%c0_52, %c0_53] : memref<1x32xf32, #tpu.memory_space<vmem>>, vector<1x32xf32>
    %110 = vector.broadcast %109 : vector<1x32xf32> to vector<8x32xf32>
    %111 = arith.addf %108, %110 : vector<8x32xf32>
    %112 = arith.addf %99, %111 : vector<8x32xf32>
    %cst_54 = arith.constant dense<0.000000e+00> : vector<8xf32>
    %113 = vector.multi_reduction <add>, %112, %cst_54 [1] : vector<8x32xf32> to vector<8xf32>
    %114 = vector.shape_cast %113 : vector<8xf32> to vector<8x1xf32>
    %cst_55 = arith.constant 3.200000e+01 : f32
    %115 = vector.broadcast %cst_55 : f32 to vector<8x1xf32>
    %116 = arith.divf %114, %115 : vector<8x1xf32>
    %117 = vector.broadcast %116 : vector<8x1xf32> to vector<8x32xf32>
    %118 = arith.subf %112, %117 : vector<8x32xf32>
    %119 = vector.broadcast %116 : vector<8x1xf32> to vector<8x32xf32>
    %120 = arith.subf %112, %119 : vector<8x32xf32>
    %121 = arith.mulf %118, %120 : vector<8x32xf32>
    %cst_56 = arith.constant dense<0.000000e+00> : vector<8xf32>
    %122 = vector.multi_reduction <add>, %121, %cst_56 [1] : vector<8x32xf32> to vector<8xf32>
    %123 = vector.shape_cast %122 : vector<8xf32> to vector<8x1xf32>
    %cst_57 = arith.constant 3.200000e+01 : f32
    %124 = vector.broadcast %cst_57 : f32 to vector<8x1xf32>
    %125 = arith.divf %123, %124 : vector<8x1xf32>
    %126 = vector.broadcast %116 : vector<8x1xf32> to vector<8x32xf32>
    %127 = arith.subf %112, %126 : vector<8x32xf32>
    %cst_58 = arith.constant 9.99999974E-6 : f32
    %128 = vector.broadcast %cst_58 : f32 to vector<8x1xf32>
    %129 = arith.addf %125, %128 : vector<8x1xf32>
    %130 = math.rsqrt %129 : vector<8x1xf32>
    %131 = vector.broadcast %130 : vector<8x1xf32> to vector<8x32xf32>
    %132 = arith.mulf %127, %131 : vector<8x32xf32>
    %c0_59 = arith.constant 0 : index
    %c0_60 = arith.constant 0 : index
    %133 = vector.load %arg12[%c0_59, %c0_60] : memref<1x32xf32, #tpu.memory_space<vmem>>, vector<1x32xf32>
    %134 = vector.broadcast %133 : vector<1x32xf32> to vector<8x32xf32>
    %135 = arith.mulf %132, %134 : vector<8x32xf32>
    %c0_61 = arith.constant 0 : index
    %c0_62 = arith.constant 0 : index
    %136 = vector.load %arg13[%c0_61, %c0_62] : memref<1x32xf32, #tpu.memory_space<vmem>>, vector<1x32xf32>
    %137 = vector.broadcast %136 : vector<1x32xf32> to vector<8x32xf32>
    %138 = arith.addf %135, %137 : vector<8x32xf32>
    %c0_63 = arith.constant 0 : index
    %c0_64 = arith.constant 0 : index
    %c0_65 = arith.constant 0 : index
    %139 = vector.load %arg14[%c0_63, %c0_64, %c0_65] : memref<1x8x32xf32, #tpu.memory_space<vmem>>, vector<1x8x32xf32>
    %140 = vector.shape_cast %139 : vector<1x8x32xf32> to vector<8x32xf32>
    %141 = vector.shape_cast %138 : vector<8x32xf32> to vector<1x8x32xf32>
    tpu.vector_store %arg14[%c0_63, %c0_64, %c0_65], %141 {strides = array<i32>} : memref<1x8x32xf32, #tpu.memory_space<vmem>>, vector<1x8x32xf32>,
    return
  }
  func.func @transform_0(%arg0: i32) -> (i32, i32, i32) {
    %c0_i32 = arith.constant 0 : i32
    %c0_i32_0 = arith.constant 0 : i32
    %c0_i32_1 = arith.constant 0 : i32
    return %arg0, %c0_i32, %c0_i32_0 : i32, i32, i32
  }
  func.func @transform_1(%arg0: i32) -> (i32, i32) {
    %c0_i32 = arith.constant 0 : i32
    %c0_i32_0 = arith.constant 0 : i32
    %c0_i32_1 = arith.constant 0 : i32
    return %c0_i32, %c0_i32_0 : i32, i32
  }
  func.func @transform_2(%arg0: i32) -> (i32, i32) {
    %c0_i32 = arith.constant 0 : i32
    %c0_i32_0 = arith.constant 0 : i32
    %c0_i32_1 = arith.constant 0 : i32
    return %c0_i32, %c0_i32_0 : i32, i32
  }
  func.func @transform_3(%arg0: i32) -> (i32, i32) {
    %c0_i32 = arith.constant 0 : i32
    %c0_i32_0 = arith.constant 0 : i32
    %c0_i32_1 = arith.constant 0 : i32
    return %c0_i32, %c0_i32_0 : i32, i32
  }
  func.func @transform_4(%arg0: i32) -> (i32, i32) {
    %c0_i32 = arith.constant 0 : i32
    %c0_i32_0 = arith.constant 0 : i32
    %c0_i32_1 = arith.constant 0 : i32
    return %c0_i32, %c0_i32_0 : i32, i32
  }
  func.func @transform_5(%arg0: i32) -> (i32, i32) {
    %c0_i32 = arith.constant 0 : i32
    %c0_i32_0 = arith.constant 0 : i32
    %c0_i32_1 = arith.constant 0 : i32
    return %c0_i32, %c0_i32_0 : i32, i32
  }
  func.func @transform_6(%arg0: i32) -> (i32, i32) {
    %c0_i32 = arith.constant 0 : i32
    %c0_i32_0 = arith.constant 0 : i32
    %c0_i32_1 = arith.constant 0 : i32
    return %c0_i32, %c0_i32_0 : i32, i32
  }
  func.func @transform_7(%arg0: i32) -> (i32, i32) {
    %c0_i32 = arith.constant 0 : i32
    %c0_i32_0 = arith.constant 0 : i32
    %c0_i32_1 = arith.constant 0 : i32
    return %c0_i32, %c0_i32_0 : i32, i32
  }
  func.func @transform_8(%arg0: i32) -> (i32, i32) {
    %c0_i32 = arith.constant 0 : i32
    %c0_i32_0 = arith.constant 0 : i32
    %c0_i32_1 = arith.constant 0 : i32
    return %c0_i32, %c0_i32_0 : i32, i32
  }
  func.func @transform_9(%arg0: i32) -> (i32, i32) {
    %c0_i32 = arith.constant 0 : i32
    %c0_i32_0 = arith.constant 0 : i32
    %c0_i32_1 = arith.constant 0 : i32
    return %c0_i32, %c0_i32_0 : i32, i32
  }
  func.func @transform_10(%arg0: i32) -> (i32, i32) {
    %c0_i32 = arith.constant 0 : i32
    %c0_i32_0 = arith.constant 0 : i32
    %c0_i32_1 = arith.constant 0 : i32
    return %c0_i32, %c0_i32_0 : i32, i32
  }
  func.func @transform_11(%arg0: i32) -> (i32, i32) {
    %c0_i32 = arith.constant 0 : i32
    %c0_i32_0 = arith.constant 0 : i32
    %c0_i32_1 = arith.constant 0 : i32
    return %c0_i32, %c0_i32_0 : i32, i32
  }
  func.func @transform_12(%arg0: i32) -> (i32, i32) {
    %c0_i32 = arith.constant 0 : i32
    %c0_i32_0 = arith.constant 0 : i32
    %c0_i32_1 = arith.constant 0 : i32
    return %c0_i32, %c0_i32_0 : i32, i32
  }
  func.func @transform_13(%arg0: i32) -> (i32, i32, i32) {
    %c0_i32 = arith.constant 0 : i32
    %c0_i32_0 = arith.constant 0 : i32
    %c0_i32_1 = arith.constant 0 : i32
    return %arg0, %c0_i32, %c0_i32_0 : i32, i32, i32
  }
}

</mosaic_0001>

<bundles_post_ra>
// kernel: tpu_custom_call.1
= control target key start
LH: loop header
LB: loop body
LE: loop exit
PB: predicated region body
PF: predicated region fallthrough
CT: control target
= control target key end

     0   :  { %18 = vsyncpa [#allocation4], 0  ;;  %s2432_s0 = inlined_call_operand.hbm [shape: f32[2,8,32], index: 0, kind: input, shape index: {}]   ;;  %s2433_s1 = inlined_call_operand.vmem [shape: f32[32,96], index: 1, kind: input, shape index: {}]   ;;  %s2434_s2 = inlined_call_operand.vmem [shape: f32[1,96], index: 2, kind: input, shape index: {}]   ;;  %s2435_s3 = inlined_call_operand.vmem [shape: f32[32,32], index: 3, kind: input, shape index: {}]   ;;  %s2436_s4 = inlined_call_operand.vmem [shape: f32[1,32], index: 4, kind: input, shape index: {}]   ;;  %s2437_s5 = inlined_call_operand.vmem [shape: f32[32,64], index: 5, kind: input, shape index: {}]   ;;  %s2438_s6 = inlined_call_operand.vmem [shape: f32[1,64], index: 6, kind: input, shape index: {}]   ;;  %s2439_s7 = inlined_call_operand.vmem [shape: f32[64,32], index: 7, kind: input, shape index: {}]   ;;  %s2440_s8 = inlined_call_operand.vmem [shape: f32[1,32], index: 8, kind: input, shape index: {}]   ;;  %s2441_s9 = inlined_call_operand.vmem [shape: f32[1,32], index: 9, kind: input, shape index: {}]   ;;  %s2442_s10 = inlined_call_operand.vmem [shape: f32[1,32], index: 10, kind: input, shape index: {}]   ;;  %s2443_s11 = inlined_call_operand.vmem [shape: f32[1,32], index: 11, kind: input, shape index: {}]   ;;  %s2444_s12 = inlined_call_operand.vmem [shape: f32[1,32], index: 12, kind: input, shape index: {}]   ;;  %s2445_s13 = inlined_call_operand.hbm [shape: f32[2,8,32], index: 13, kind: output, shape index: {}]  }
   0x1   :  { %20 = vsyncpa [#allocation4 + $0x1], 0 }
   0x2   :  { %21 = vsyncpa [#allocation5], 0 }
   0x3   :  { %23 = vsyncpa [#allocation5 + $0x1], 0  ;;  %s2094_s25 = smov 0   ;;  %s2096_s26 = smov 0  }
   0x4   :  { %s2098_s27 = smov 0   ;;  %s2100_s28 = smov 0  }
   0x5 LB: > { %2451 = sst [smem:[#allocation9_spill]] %s1991_s25  ;;  %s2115_s29 = sadd.s32 4294967295, %s2003_s28   ;;  %s2003_s28 = sphi %s2100_s28, %s2466_s28   ;;  %s1999_s27 = sphi %s2098_s27, %s2468_s27   ;;  %s1995_s26 = sphi %s2096_s26, %s2470_s26   ;;  %s1991_s25 = sphi %s2094_s25, %s2469_s25  }
   0x6   : > { %2452 = sst [smem:[#allocation10_spill]] %s1999_s27  ;;  %s1626_s30 = sadd.s32 4294967294, %s2003_s28  }
   0x7   : > { %s2119_s14 = sadd.s32 1, %s2003_s28   ;;  %s36_s15 = sadd.s32 1, %s1999_s27 }
   0x8   : > { %2453 = sst [smem:[#allocation11_spill]] %s2119_s14  ;;  %s33_s16 = ssub.s32 %s2003_s28, %s2119_s14 }
   0x9   : > { %p43_p0 = scmp.ne.s32.totalorder %s1999_s27, %s1995_s26  ;;  %p34_p1 = scmp.eq.s32.totalorder %s33_s16, 0 }
   0xa   : > { %p44_p2 = scmp.eq.s32.totalorder %s2003_s28, 0  ;;  %p49_p3 = scmp.ne.s32.totalorder %s1995_s26, %s1991_s25 }
   0xb   : > { %p50_p4 = scmp.eq.s32.totalorder %s2115_s29, 0  ;;  %p325_p7 = scmp.eq.s32.totalorder %s2115_s29, 1 }
   0xc   : > { %s2131_s17 = scalar_select %p34_p1, %s1999_s27, %s36_s15  }
   0xd   : > { %p2133_p5 = por %p44_p2, %p43_p0  ;;  %p2137_p6 = por %p50_p4, %p49_p3 }
   0xe   : > { %2454 = sst [smem:[#allocation12_spill]] %s2131_s17  ;;  %p331_p8 = scmp.eq.s32.totalorder %s1626_s30, 1 }
   0xf   : > { %p1836_p10 = scmp.lt.s32.totalorder %s2003_s28, 2  ;;  %p2144_p11 = por %p325_p7, %p43_p0 }
  0x10   : > { %p2148_p12 = por %p331_p8, %p49_p3  ;;  %s387_s22 = sand.u32 1, %s1999_s27  }
  0x11   : > { %s2457_s20 = scalar_select %p2144_p11, 1, 0 }
  0x12   : > { %s2458_s21 = scalar_select %p2148_p12, 1, 0 }
  0x13   : > { %s1630_s23 = sshll.u32 %s2003_s28, 7  ;;  %s1629_s24 = sshll.u32 %s387_s22, 3 }
  0x14   : > { %s2157_s17 = scalar_lea.hbm %s2432_s0, %s1630_s23  ;;  %s391_s30 = scalar_lea.vmem [#allocation3], %s1629_s24 }
  0x15   : > { %s398_s14 = sshll.u32 %s391_s30, 4  ;;  %p2161_p13 = pnand %p1836_p10, %p2133_p5  ;;  %s2165_s14 = int_to_ptr.vmem [resolvable:$true] %s398_s14 }
  0x16   : > { %s388_s15 = scalar_lea.sflag [#allocation4], %s387_s22  ;;  %s1907_s23 = scalar_lea.hbm %s2157_s17, 128 }
  0x17   : > { %p1908_p2 = scmp.ne.s32.totalorder %s2157_s17, %s1907_s23  ;;  %p1909_p3 = pneg %p2161_p13 }
  0x18   : > { %s1912_s16 = scalar_lea.hbm %s2432_s0, 256  ;;  %p1913_p5 = scmp.lt.u32.totalorder %s2157_s17, %s2432_s0 }
  0x19   : > { %p1910_p4 = pnand %p1909_p3, %p1908_p2  ;;  %p1914_p8 = scmp.lt.u32.totalorder %s1912_s16, %s1907_s23 }
  0x1a   : > { %p1916_p9 = scmp.lt.u32.totalorder %s1907_s23, %s2157_s17 }
  0x1b   : > { %p1911_p7 = pneg %p1910_p4  ;;  %p1915_p10 = por %p1914_p8, %p1913_p5 }
  0x1d   : > { %p1917_p0 = por %p1916_p9, %p1915_p10 }
  0x1f   : > { %p1918_p1 = pnand %p1917_p0, %p1911_p7 }
  0x21   : > { %1921 = shalt.err (!%p1918_p1)
}
  0x22   : > { %s1922_s22 = scalar_lea.vmem %s2165_s14, 128  ;;  %s2005_s18 = smov [#allocation3]  }
  0x23   : > { %p1923_p2 = scmp.ne.s32.totalorder %s2165_s14, %s1922_s22  ;;  %s1927_s24 = sshll.u32 %s2005_s18, 4  ;;  %s1928_s24 = int_to_ptr.vmem [resolvable:$false] %s1927_s24 }
  0x24   : > { %s1929_s27 = scalar_lea.vmem %s1928_s24, 256  ;;  %p1930_p11 = scmp.lt.s32.totalorder %s2165_s14, %s1928_s24 }
  0x25   : > { %p1925_p4 = pnand %p1923_p2, %p1909_p3  ;;  %p1931_p5 = scmp.lt.s32.totalorder %s1929_s27, %s1922_s22 }
  0x27   : > { %p1926_p12 = pneg %p1925_p4  ;;  %p1932_p8 = por %p1931_p5, %p1930_p11 }
  0x29   : > { %p1933_p9 = pnand %p1932_p8, %p1926_p12 }
  0x2b   : > { %1936 = shalt.err (!%p1933_p9)
}
  0x2c   : > { %1831 = dma.hbm_to_vmem [thread:$0]  (!%p2161_p13), %s2157_s17, 128, %s2165_s14, %s388_s15  }
  0x2d   : > { %p2460_p0 = scmp.lt.s32.totalorder %s2003_s28, 3  ;;  %p2461_p1 = scmp.ge.s32.totalorder %s2003_s28, 1 }
  0x2f   : > { %p404_p3 = pnand %p2461_p1, %p2460_p0 }
  0x30   : > { %s2199_s23 = sand.u32 (!%p404_p3), 1, %s1995_s26  }
  0x31   : > { %407 = sbr.rel (%p404_p3) target bundleno = 2605 (0xa2d), region = 72  ;;  %s1632_s16 = sshll.u32 (!%p404_p3), %s2199_s23, 3 }
  0x32   : > { %s410_s30 = scalar_lea.sflag (!%p404_p3), [#allocation4], %s2199_s23  ;;  %s413_s25 = scalar_lea.vmem (!%p404_p3), [#allocation3], %s1632_s16 }
  0x38   : > { %1982 = dma.done.wait (%p2137_p6), %s410_s30, 128  }
  0x39   : > { %1984 = vsyncadd (%p2137_p6), %s410_s30, 4294967168  ;;  %v2006_v0 = vmov 0.0|0.0   ;;  %vm2007_vm0 = vmmov 0   ;;  %v2008_v1 = vmov 0.0   ;;  %v457_v2 = vld [vmem:[%s2433_s1] sm:$0xff]  ;;  %v458_v3 = vld [vmem:[%s2433_s1 + $0x8] sm:$0xff] }
  0x3a   : > { %1794 = vmatprep.subr.bf16.mxu1 %v2006_v0  ;;  %1710 = vmatprep.mubr.msk.f32.mxu1 %vm2007_vm0, %v2008_v1  ;;  %v459_v4 = vld [vmem:[%s2433_s1 + $0x10] sm:$0xff]  ;;  %v1795_v5 = vpack.c.bf16 %v458_v3, %v457_v2  ;;  %v460_v6 = vld [vmem:[%s2433_s1 + $0x18] sm:$0xff]  ;;  %vm468_vm1 = vcmask 261120   ;;  %v1634_v9 = vld [vmem:[%s2434_s2] ss:$0 sm:$0xff]  ;;  %s2009_s17 = smov 120  }
  0x3b   : > { %1723 = vmatprep.subr.mxu0 %v2008_v1  ;;  %1725 = vmatprep.mubr.msk.f32.mxu0 %vm2007_vm0, %v2008_v1  ;;  %v1798_v7 = vpack.c.bf16 %v460_v6, %v459_v4  ;;  %v2228_v8 = vld [vmem:[%s413_s25] sm:$0xff]  ;;  %s2010_s25 = smov 96   ;;  %s2011_s15 = smov 80   ;;  %vm545_vm2 = vcmask 64512   ;;  %vm877_vm3 = vcmask 130112   ;;  %vm1048_vm4 = vcmask 195712  }
  0x3c   : > { %1796 = vmatpush3.bf16.msra.mxu1 %v1795_v5  ;;  %s2012_s19 = smov 88   ;;  %s2013_s22 = smov 72   ;;  %vm1219_vm5 = vcmask 261312   ;;  %vm1437_vm6 = vcmask 523264  }
  0x3d   : > { %1797 = vmatprep.subr.bf16.mxu1 %v2006_v0  ;;  %s2014_s18 = smov 112   ;;  %s2015_s24 = smov 104  }
  0x3e   : > { %s2016_s27 = smov 56   ;;  %s2017_s30 = smov 64  }
  0x3f   : > { %s2018_s14 = smov 48   ;;  %p2462_p11 = scmp.ne.s32.totalorder %s2457_s20, 0 }
  0x40   : > { %1799 = vmatpush3.bf16.msra.mxu1 %v1798_v7 }
  0x41   : > { %1713 = vmatprep.subr.mxu1 %v2008_v1 }
  0x43   : > { %1711 = vmatmul.mubr.msk.f32.vlgmr.msra.gmra.mrb[0].mxu1 %vm468_vm1, %v2228_v8 }
  0x44   : > { %1715 = vmatprep.mubr.msk.f32.mxu1 %vm2007_vm0, %v2008_v1 }
 0x116   : > { %v538_v10 = vpop.f32.mrb[0].mxu1 }
 0x117   : > { %v2238_v11 = vadd.f32 %v1634_v9, %v538_v10  ;;  %v1712_v12 = vpop.f32.mrb[1].mxu1 }
 0x118   : > { %v1223_v12 = vld [vmem:[%s2435_s3 + $0x8] sm:$0xff] }
 0x119   : > { %708 = vrot.lane.b32.xlu1 %v2238_v11, %s2009_s17  ;;  %543 = vrot.lane.b32.xlu0 %v2238_v11, %s2010_s25  ;;  %s2019_s17 = smov 40   ;;  %s2020_s25 = smov 8  }
 0x11d   : > { %881 = vrot.lane.b32.xlu1 %v2238_v11, %s2011_s15  ;;  %710 = vrot.lane.b32.xlu0 %v2238_v11, %s2012_s19 }
 0x121   : > { %1052 = vrot.lane.b32.xlu1 %v2238_v11, %s2013_s22  ;;  %879 = vrot.lane.b32.xlu0 %v2238_v11, %s2014_s18 }
 0x125   : > { %1050 = vrot.lane.b32.xlu0 %v2238_v11, %s2015_s24  ;;  %s1543_s24 = scalar_lea.sflag [#allocation5], %s2199_s23 }
 0x18b   : > { %v709_v13 = vpop.permute.xlu1 %708  ;;  %v544_v14 = vpop.permute.xlu0 %543 }
 0x18c   : > { %1714 = vmatpush3.xpose.msk.msra.mxu1 %vm545_vm2, %v544_v14  ;;  %v1224_v14 = vld [vmem:[%s2435_s3 + $0x10] sm:$0xff] }
 0x18d   : > { %1718 = vmatprep.subr.mxu1 %v2008_v1 }
 0x18f   : > { %1716 = vmatmul.mubr.msk.f32.vlgmr.msra.gmra.mrb[2].mxu1 %vm545_vm2, %v2238_v11  ;;  %v711_v15 = vpop.permute.xlu0 %710  ;;  %v882_v16 = vpop.permute.xlu1 %881 }
 0x190   : > { %1724 = vmatpush3.xpose.msk.msra.mxu0 %vm545_vm2, %v711_v15  ;;  %1720 = vmatprep.mubr.msk.f32.mxu1 %vm2007_vm0, %v2008_v1  ;;  %v1225_v15 = vld [vmem:[%s2435_s3 + $0x18] sm:$0xff] }
 0x191   : > { %1733 = vmatprep.subr.mxu0 %v2008_v1 }
 0x193   : > { %1726 = vmatmul.mubr.msk.f32.vlgmr.msra.gmra.mrb[0].mxu0 %vm545_vm2, %v709_v13  ;;  %v880_v17 = vpop.permute.xlu0 %879  ;;  %v1053_v18 = vpop.permute.xlu1 %1052 }
 0x194   : > { %1734 = vmatpush3.xpose.msk.msra.mxu0 %vm545_vm2, %v882_v16  ;;  %1735 = vmatprep.mubr.msk.f32.mxu0 %vm2007_vm0, %v2008_v1  ;;  %v1804_v16 = vpack.c.bf16 %v1225_v15, %v1224_v14 }
 0x195   : > { %1743 = vmatprep.subr.mxu0 %v2008_v1 }
 0x197   : > { %1736 = vmatmul.mubr.msk.f32.vlgmr.msra.gmra.mrb[2].mxu0 %vm545_vm2, %v880_v17  ;;  %v1051_v19 = vpop.permute.xlu0 %1050 }
 0x198   : > { %1744 = vmatpush3.xpose.msk.msra.mxu0 %vm545_vm2, %v1053_v18  ;;  %1745 = vmatprep.mubr.msk.f32.mxu0 %vm2007_vm0, %v2008_v1 }
 0x199   : > { %1800 = vmatprep.subr.bf16.mxu0 %v2006_v0 }
 0x19b   : > { %1746 = vmatmul.mubr.msk.f32.vlgmr.msra.gmra.mrb[4].mxu0 %vm545_vm2, %v1051_v19 }
 0x19c   : > { %1761 = vmatprep.mubr.msk.f32.mxu0 %vm2007_vm0, %v2008_v1 }
 0x262   : > { %v616_v20 = vpop.f32.mrb[2].mxu1 }
 0x263   : > { %v1717_v21 = vpop.f32.mrb[3].mxu1  ;;  %v620_v22 = vsel %vm545_vm2, %v616_v20, -inf }
 0x264   : > { %621 = vmax.xlane.f32.xlu1 %v620_v22 }
 0x266   : > { %v782_v23 = vpop.f32.mrb[0].mxu0 }
 0x267   : > { %v1727_v24 = vpop.f32.mrb[1].mxu0  ;;  %v786_v25 = vsel %vm545_vm2, %v782_v23, -inf }
 0x268   : > { %787 = vmax.xlane.f32.xlu0 %v786_v25  ;;  %v1648_v25 = vld [vmem:[%s2436_s4] ss:$0 sm:$0xff] }
 0x26a   : > { %v953_v26 = vpop.f32.mrb[2].mxu0 }
 0x26b   : > { %v1737_v27 = vpop.f32.mrb[3].mxu0  ;;  %v957_v28 = vsel %vm545_vm2, %v953_v26, -inf }
 0x26c   : > { %958 = vmax.xlane.f32.xlu0 %v957_v28 }
 0x26e   : > { %v1124_v29 = vpop.f32.mrb[4].mxu0 }
 0x26f   : > { %v1747_v30 = vpop.f32.mrb[5].mxu0  ;;  %v1128_v31 = vsel %vm545_vm2, %v1124_v29, -inf }
 0x270   : > { %1129 = vmax.xlane.f32.xlu1 %v1128_v31 }
 0x281   : > { %797 = vrot.lane.b32.xlu1 %v2238_v11, %s2016_s27 }
 0x2f1   : > { %v622_v32 = vpop.xlane.xlu1 %621 }
 0x2f2   : > { %v623_v33 = vsub.f32 %v616_v20, %v622_v32 }
 0x2f4   : > { %v624_v34 = vmul.f32 1.442695, %v623_v33 }
 0x2f5   : > { %v788_v35 = vpop.xlane.xlu0 %787 }
 0x2f6   : > { %1887 = vpow2.f32 %v624_v34  ;;  %v789_v36 = vsub.f32 %v782_v23, %v788_v35 }
 0x2f8   : > { %v790_v37 = vmul.f32 1.442695, %v789_v36  ;;  %v1338_v36 = vld [vmem:[%s2437_s5 + $0x8] sm:$0xff] }
 0x2f9   : > { %v959_v47 = vpop.xlane.xlu0 %958 }
 0x2fa   : > { %1889 = vpow2.f32 %v790_v37  ;;  %v960_v48 = vsub.f32 %v953_v26, %v959_v47  ;;  %v1427_v47 = vld [vmem:[%s2439_s7 + $0x28] sm:$0xff] }
 0x2fc   : > { %v961_v49 = vmul.f32 1.442695, %v960_v48 }
 0x2fd   : > { %v1130_v38 = vpop.xlane.xlu1 %1129 }
 0x2fe   : > { %v1131_v39 = vsub.f32 %v1124_v29, %v1130_v38  ;;  %v1340_v38 = vld [vmem:[%s2437_s5 + $0x18] sm:$0xff] }
 0x300   : > { %v1888_v40 = vpop.eup %1887  ;;  %v1132_v41 = vmul.f32 1.442695, %v1131_v39 }
 0x301   : > { %v626_v42 = vsel %vm545_vm2, %v1888_v40, 0.0  ;;  %v798_v52 = vpop.permute.xlu1 %797 }
 0x302   : > { %1891 = vpow2.f32 %v1132_v41  ;;  %627 = vadd.xlane.f32.xlu0 %v626_v42  ;;  %v1423_v41 = vld [vmem:[%s2439_s7 + $0x8] sm:$0xff]  ;;  %v1424_v42 = vld [vmem:[%s2439_s7 + $0x10] sm:$0xff] }
 0x303   : > { %1893 = vpow2.f32 %v961_v49 }
 0x304   : > { %v1890_v43 = vpop.eup %1889 }
 0x305   : > { %v792_v44 = vsel %vm545_vm2, %v1890_v43, 0.0 }
 0x306   : > { %793 = vadd.xlane.f32.xlu1 %v792_v44  ;;  %v1425_v44 = vld [vmem:[%s2439_s7 + $0x18] sm:$0xff] }
 0x30c   : > { %v1892_v45 = vpop.eup %1891 }
 0x30d   : > { %v1134_v46 = vsel %vm545_vm2, %v1892_v45, 0.0  ;;  %v1894_v50 = vpop.eup %1893 }
 0x30e   : > { %1135 = vadd.xlane.f32.xlu1 %v1134_v46  ;;  %v963_v51 = vsel %vm545_vm2, %v1894_v50, 0.0  ;;  %v1426_v46 = vld [vmem:[%s2439_s7 + $0x20] sm:$0xff] }
 0x30f   : > { %v1819_v48 = vpack.c.bf16 %v1427_v47, %v1426_v46 }
 0x318   : > { %631 = vrot.lane.b32.xlu0 %v2238_v11, %s2017_s30 }
 0x31f   : > { %968 = vrot.lane.b32.xlu1 %v2238_v11, %s2018_s14 }
 0x337   : > { %964 = vadd.xlane.f32.xlu0 %v963_v51 }
 0x34d   : > { %1139 = vrot.lane.b32.xlu0 %v2238_v11, %s2019_s17  ;;  %v1222_v11 = vld [vmem:[%s2435_s3] sm:$0xff]  ;;  %s2021_s17 = smov 16  }
 0x34e   : > { %v1801_v13 = vpack.c.bf16 %v1223_v12, %v1222_v11 }
 0x350   : > { %1802 = vmatpush3.bf16.msra.mxu0 %v1801_v13 }
 0x351   : > { %1803 = vmatprep.subr.bf16.mxu0 %v2006_v0 }
 0x354   : > { %1805 = vmatpush3.bf16.msra.mxu0 %v1804_v16 }
 0x355   : > { %1812 = vmatprep.subr.bf16.mxu0 %v2006_v0 }
 0x38f   : > { %v628_v53 = vpop.xlane.xlu0 %627 }
 0x390   : > { %1895 = vrcp.f32 %v628_v53  ;;  %v1650_v53 = vld [vmem:[%s2441_s9] ss:$0 sm:$0xff] }
 0x393   : > { %v632_v54 = vpop.permute.xlu0 %631  ;;  %v794_v55 = vpop.xlane.xlu1 %793 }
 0x394   : > { %1897 = vrcp.f32 %v794_v55  ;;  %1719 = vmatpush3.msra.mxu1 %v632_v54  ;;  %v1651_v55 = vld [vmem:[%s2442_s10] ss:$0 sm:$0xff] }
 0x395   : > { %1728 = vmatprep.subr.mxu1 %v2008_v1 }
 0x39a   : > { %v1896_v56 = vpop.eup %1895 }
 0x39b   : > { %v630_v57 = vmul.f32 %v1896_v56, %v1888_v40  ;;  %v1136_v58 = vpop.xlane.xlu1 %1135  ;;  %v1422_v40 = vld [vmem:[%s2439_s7] sm:$0xff] }
 0x39d   : > { %1721 = vmatmul.mubr.msk.f32.vlgmr.msra.gmra.mrb[4].mxu1 %vm545_vm2, %v630_v57 }
 0x39e   : > { %v1898_v59 = vpop.eup %1897  ;;  %1729 = vmatpush3.msra.mxu1 %v798_v52  ;;  %1730 = vmatprep.mubr.msk.f32.mxu1 %vm2007_vm0, %v2008_v1 }
 0x39f   : > { %v796_v60 = vmul.f32 %v1898_v59, %v1890_v43  ;;  %v969_v61 = vpop.permute.xlu1 %968  ;;  %1738 = vmatprep.subr.mxu1 %v2008_v1  ;;  %v1813_v43 = vpack.c.bf16 %v1423_v41, %v1422_v40 }
 0x3a1   : > { %1731 = vmatmul.mubr.msk.f32.vlgmr.msra.gmra.mrb[6].mxu1 %vm545_vm2, %v796_v60  ;;  %v1652_v60 = vld [vmem:[%s2438_s6] ss:$0 sm:$0xff] }
 0x3a2   : > { %1739 = vmatpush3.msra.mxu1 %v969_v61  ;;  %1740 = vmatprep.mubr.msk.f32.mxu1 %vm2007_vm0, %v2008_v1 }
 0x3a3   : > { %1748 = vmatprep.subr.mxu1 %v2008_v1 }
 0x3c4   : > { %v965_v62 = vpop.xlane.xlu0 %964 }
 0x3c5   : > { %1899 = vrcp.f32 %v965_v62 }
 0x3c6   : > { %1901 = vrcp.f32 %v1136_v58  ;;  %v1429_v58 = vld [vmem:[%s2439_s7 + $0x38] sm:$0xff] }
 0x3c8   : > { %v1140_v4 = vpop.permute.xlu0 %1139 }
 0x3cf   : > { %v1900_v63 = vpop.eup %1899 }
 0x3d0   : > { %v967_v2 = vmul.f32 %v1900_v63, %v1894_v50  ;;  %v1902_v3 = vpop.eup %1901 }
 0x3d1   : > { %v1138_v5 = vmul.f32 %v1902_v3, %v1892_v45  ;;  %v1816_v45 = vpack.c.bf16 %v1425_v44, %v1424_v42  ;;  %v1654_v3 = vld [vmem:[%s2440_s8] ss:$0 sm:$0xff] }
 0x3d2   : > { %1741 = vmatmul.mubr.msk.f32.vlgmr.msra.gmra.mrb[8].mxu1 %vm545_vm2, %v967_v2 }
 0x3d3   : > { %1749 = vmatpush3.msra.mxu1 %v1140_v4  ;;  %1750 = vmatprep.mubr.msk.f32.mxu1 %vm2007_vm0, %v2008_v1 }
 0x3d4   : > { %1806 = vmatprep.subr.bf16.mxu1 %v2006_v0 }
 0x3d6   : > { %1751 = vmatmul.mubr.msk.f32.vlgmr.msra.gmra.mrb[10].mxu1 %vm545_vm2, %v1138_v5 }
 0x3d7   : > { %1772 = vmatprep.mubr.msk.f32.mxu1 %vm2007_vm0, %v2008_v1 }
 0x470   : > { %v703_v6 = vpop.f32.mrb[4].mxu1 }
 0x471   : > { %707 = vst.msk [vmem:[#allocation2] sm:$0xff] %vm545_vm2, %v703_v6  ;;  %v1722_v7 = vpop.f32.mrb[5].mxu1 }
 0x474   : > { %v869_v9 = vpop.f32.mrb[6].mxu1 }
 0x475   : > { %874 = vrot.lane.b32.xlu1 %v869_v9, %s2020_s25  ;;  %v1732_v10 = vpop.f32.mrb[7].mxu1  ;;  %s2022_s25 = smov 24  }
 0x4a5   : > { %v1040_v17 = vpop.f32.mrb[8].mxu1 }
 0x4a6   : > { %1045 = vrot.lane.b32.xlu0 %v1040_v17, %s2021_s17  ;;  %v1742_v18 = vpop.f32.mrb[9].mxu1  ;;  %s1659_s17 = sshll.u32 %s2115_s29, 7  ;;  %s2023_s29 = smov [#allocation6]  }
 0x4a7   : > { %s2387_s18 = scalar_lea.hbm %s2445_s13, %s1659_s17 }
 0x4a9   : > { %v1211_v19 = vpop.f32.mrb[10].mxu1 }
 0x4aa   : > { %1216 = vrot.lane.b32.xlu1 %v1211_v19, %s2022_s25  ;;  %v1752_v20 = vpop.f32.mrb[11].mxu1  ;;  %v1656_v19 = vld [vmem:[%s2443_s11] ss:$0 sm:$0xff]  ;;  %s455_s25 = scalar_lea.vmem [#allocation6], %s1632_s16  ;;  %s1941_s16 = sshll.u32 %s2023_s29, 4  ;;  %s1942_s16 = int_to_ptr.vmem [resolvable:$false] %s1941_s16 }
 0x4ab   : > { %s1556_s15 = sshll.u32 %s455_s25, 4  ;;  %s1943_s30 = scalar_lea.vmem %s1942_s16, 256  ;;  %s2389_s15 = int_to_ptr.vmem [resolvable:$true] %s1556_s15 }
 0x4ac   : > { %s1937_s27 = scalar_lea.vmem %s2389_s15, 128  ;;  %p1944_p7 = scmp.lt.s32.totalorder %s2389_s15, %s1942_s16 }
 0x4ad   : > { %p1938_p6 = scmp.ne.s32.totalorder %s2389_s15, %s1937_s27  ;;  %p1945_p10 = scmp.lt.s32.totalorder %s1943_s30, %s1937_s27 }
 0x4af   : > { %p1939_p12 = pnand %p1938_p6, %p2462_p11  ;;  %p1946_p2 = por %p1945_p10, %p1944_p7 }
 0x4b1   : > { %p1940_p13 = pneg %p1939_p12 }
 0x4b3   : > { %p1947_p4 = pnand %p1946_p2, %p1940_p13 }
 0x4e7   : > { %v875_v21 = vpop.permute.xlu1 %874 }
 0x4e8   : > { %878 = vst.msk [vmem:[#allocation2] sm:$0xff] %vm877_vm3, %v875_v21  ;;  %v1657_v21 = vld [vmem:[%s2444_s12] ss:$0 sm:$0xff] }
 0x518   : > { %v1046_v22 = vpop.permute.xlu0 %1045 }
 0x519   : > { %1049 = vst.msk [vmem:[#allocation2] sm:$0xff] %vm1048_vm4, %v1046_v22 }
 0x51c   : > { %v1217_v23 = vpop.permute.xlu1 %1216 }
 0x51d   : > { %1220 = vst.msk [vmem:[#allocation2] sm:$0xff] %vm1219_vm5, %v1217_v23 }
 0x524   : > { %v1221_v24 = vld [vmem:[#allocation2] sm:$0xff] }
 0x525   : > { %1762 = vmatmul.mubr.msk.f32.vlgmr.msra.gmra.mrb[6].mxu0 %vm468_vm1, %v1221_v24 }
 0x526   : > { %1791 = vmatprep.mubr.msk.f32.mxu0 %vm2007_vm0, %v2008_v1  ;;  %v1337_v1 = vld [vmem:[%s2437_s5] sm:$0xff]  ;;  %1814 = vmatpush3.bf16.msra.mxu0 %v1813_v43 }
 0x527   : > { %v1807_v37 = vpack.c.bf16 %v1338_v36, %v1337_v1  ;;  %1815 = vmatprep.subr.bf16.mxu0 %v2006_v0 }
 0x529   : > { %1808 = vmatpush3.bf16.msra.mxu1 %v1807_v37 }
 0x52a   : > { %1809 = vmatprep.subr.bf16.mxu1 %v2006_v0  ;;  %1817 = vmatpush3.bf16.msra.mxu0 %v1816_v45 }
 0x52b   : > { %1818 = vmatprep.subr.bf16.mxu0 %v2006_v0 }
 0x52e   : > { %1820 = vmatpush3.bf16.msra.mxu0 %v1819_v48 }
 0x52f   : > { %1821 = vmatprep.subr.bf16.mxu0 %v2006_v0  ;;  %v1428_v0 = vld [vmem:[%s2439_s7 + $0x30] sm:$0xff] }
 0x530   : > { %v1822_v59 = vpack.c.bf16 %v1429_v58, %v1428_v0 }
 0x532   : > { %1823 = vmatpush3.bf16.msra.mxu0 %v1822_v59 }
 0x5f8   : > { %v1302_v26 = vpop.f32.mrb[6].mxu0 }
 0x5f9   : > { %v1303_v27 = vadd.f32 %v1648_v25, %v1302_v26  ;;  %v1763_v28 = vpop.f32.mrb[7].mxu0 }
 0x5fb   : > { %v1306_v29 = vadd.f32 %v1303_v27, %v2228_v8  ;;  %v1339_v8 = vld [vmem:[%s2437_s5 + $0x10] sm:$0xff] }
 0x5fc   : > { %v1810_v39 = vpack.c.bf16 %v1340_v38, %v1339_v8 }
 0x5fd   : > { %v1307_v30 = vsel %vm468_vm1, %v1306_v29, 0.0 }
 0x5fe   : > { %1308 = vadd.xlane.f32.xlu0 %v1307_v30  ;;  %1811 = vmatpush3.bf16.msra.mxu1 %v1810_v39 }
 0x68b   : > { %v1309_v31 = vpop.xlane.xlu0 %1308 }
 0x68c   : > { %v1311_v32 = vmul.f32 0.03125, %v1309_v31 }
 0x68e   : > { %v1312_v33 = vsub.f32 %v1306_v29, %v1311_v32 }
 0x690   : > { %v1313_v34 = vmul.f32 %v1312_v33, %v1312_v33 }
 0x692   : > { %v1314_v35 = vsel %vm468_vm1, %v1313_v34, 0.0 }
 0x693   : > { %1315 = vadd.xlane.f32.xlu1 %v1314_v35 }
 0x720   : > { %v1316_v49 = vpop.xlane.xlu1 %1315 }
 0x721   : > { %v1317_v50 = vmul.f32 0.03125, %v1316_v49 }
 0x723   : > { %v1318_v51 = vadd.f32 1e-05, %v1317_v50 }
 0x725   : > { %1903 = vrsqrt.f32 %v1318_v51 }
 0x72f   : > { %v1904_v52 = vpop.eup %1903 }
 0x730   : > { %v1320_v54 = vmul.f32 %v1904_v52, %v1312_v33 }
 0x732   : > { %v1328_v56 = vmul.f32 %v1650_v53, %v1320_v54 }
 0x734   : > { %v1336_v57 = vadd.f32 %v1651_v55, %v1328_v56 }
 0x736   : > { %1773 = vmatmul.mubr.msk.f32.vlgmr.msra.gmra.mrb[12].mxu1 %vm468_vm1, %v1336_v57 }
 0x809   : > { %v1417_v61 = vpop.f32.mrb[12].mxu1 }
 0x80a   : > { %v1418_v62 = vadd.f32 %v1652_v60, %v1417_v61  ;;  %v1774_v63 = vpop.f32.mrb[13].mxu1 }
 0x80c   : > { %v1421_v2 = vmax.f32 %v1418_v62, 0.0 }
 0x80e   : > { %1792 = vmatmul.mubr.msk.f32.vlgmr.msra.gmra.mrb[8].mxu0 %vm1437_vm6, %v1421_v2 }
 0x8e1   : > { %v1507_v4 = vpop.f32.mrb[8].mxu0 }
 0x8e2   : > { %v1508_v5 = vadd.f32 %v1654_v3, %v1507_v4  ;;  %v1793_v6 = vpop.f32.mrb[9].mxu0 }
 0x8e4   : > { %v1511_v7 = vadd.f32 %v1508_v5, %v1336_v57 }
 0x8e6   : > { %v1512_v9 = vsel %vm468_vm1, %v1511_v7, 0.0 }
 0x8e7   : > { %1513 = vadd.xlane.f32.xlu0 %v1512_v9 }
 0x974   : > { %v1514_v10 = vpop.xlane.xlu0 %1513 }
 0x975   : > { %v1515_v11 = vmul.f32 0.03125, %v1514_v10 }
 0x977   : > { %v1516_v12 = vsub.f32 %v1511_v7, %v1515_v11 }
 0x979   : > { %v1517_v13 = vmul.f32 %v1516_v12, %v1516_v12 }
 0x97b   : > { %v1518_v14 = vsel %vm468_vm1, %v1517_v13, 0.0 }
 0x97c   : > { %1519 = vadd.xlane.f32.xlu0 %v1518_v14 }
 0xa09   : > { %v1520_v15 = vpop.xlane.xlu0 %1519 }
 0xa0a   : > { %v1521_v16 = vmul.f32 0.03125, %v1520_v15 }
 0xa0c   : > { %v1522_v17 = vadd.f32 1e-05, %v1521_v16 }
 0xa0e   : > { %1905 = vrsqrt.f32 %v1522_v17 }
 0xa18   : > { %v1906_v18 = vpop.eup %1905 }
 0xa19   : > { %v1524_v20 = vmul.f32 %v1906_v18, %v1516_v12 }
 0xa1b   : > { %v1532_v22 = vmul.f32 %v1656_v19, %v1524_v20 }
 0xa1d   : > { %v1540_v23 = vadd.f32 %v1657_v21, %v1532_v22 }
 0xa1f   : > { %1541 = vst.msk [vmem:[%s455_s25] sm:$0xff] %vm468_vm1, %v1540_v23 }
 0xa20   : > { %1950 = shalt.err (!%p1947_p4)
}
 0xa21   : > { %s1951_s23 = scalar_lea.hbm %s2387_s18, 128  ;;  %s1955_s25 = scalar_lea.hbm %s2445_s13, 256 }
 0xa22   : > { %p1952_p5 = scmp.ne.s32.totalorder %s2387_s18, %s1951_s23  ;;  %p1956_p0 = scmp.lt.u32.totalorder %s2387_s18, %s2445_s13 }
 0xa23   : > { %p1957_p1 = scmp.lt.u32.totalorder %s1955_s25, %s1951_s23  ;;  %p1959_p6 = scmp.lt.u32.totalorder %s1951_s23, %s2387_s18 }
 0xa24   : > { %p1953_p8 = pnand %p1952_p5, %p2462_p11 }
 0xa25   : > { %p1958_p3 = por %p1957_p1, %p1956_p0 }
 0xa26   : > { %p1954_p9 = pneg %p1953_p8 }
 0xa27   : > { %p1960_p12 = por %p1959_p6, %p1958_p3 }
 0xa29   : > { %p1961_p13 = pnand %p1960_p12, %p1954_p9 }
 0xa2b   : > { %1964 = shalt.err (!%p1961_p13)
}
 0xa2c   : > { %1826 = dma.vmem_to_hbm [thread:$0]  (%p2462_p11), %s2389_s15, 128, %s2387_s18, %s1543_s24  }
 0xa2d PF: > { %s2463_s27 = sld [smem:[#allocation9_spill]]  ;;  %p2464_p7 = scmp.ne.s32.totalorder %s2458_s21, 0 }
 0xa2e   : > { %p2465_p10 = scmp.ge.s32.totalorder %s2003_s28, 2 }
 0xa30   : > { %p1833_p2 = pnand %p2465_p10, %p2464_p7 }
 0xa33   : > { %s1568_s29 = sand.u32 1, %s2463_s27  }
 0xa34   : > { %s1569_s16 = scalar_lea.sflag [#allocation5], %s1568_s29 }
 0xa35   : > { %1986 = dma.done.wait (!%p1833_p2), %s1569_s16, 128  }
 0xa36   : > { %1988 = vsyncadd (!%p1833_p2), %s1569_s16, 4294967168  ;;  %s2466_s28 = sld [smem:[#allocation11_spill]]  ;;  %s2467_s30 = sld [smem:[#allocation10_spill]] }
 0xa37   : > { %s2468_s27 = sld [smem:[#allocation12_spill]]  ;;  %s2469_s25 = smov %s1995_s26 }
 0xa3c   : > { %p26_p4 = scmp.ge.s32.totalorder %s2466_s28, 4   ;;  %s2470_s26 = smov %s2467_s30 }
 0xa3e   :  { %28 = sbr.rel (!%p26_p4) target bundleno = 5 (0x5), region = 117 }
 0xa45   :  { %1574 = vsyncpa [#allocation4], 1 }
 0xa46   :  { %1576 = vsyncpa [#allocation4 + $0x1], 1 }
 0xa47   :  { %1577 = vsyncpa [#allocation5], 1 }
 0xa48   :  { %1579 = vsyncpa [#allocation5 + $0x1], 1 }

// kernel: tpu_custom_call.1
= control target key start
LH: loop header
LB: loop body
LE: loop exit
PB: predicated region body
PF: predicated region fallthrough
CT: control target
= control target key end

     0   :  { %18 = vsyncpa [#allocation4], 0  ;;  %s2432_s0 = inlined_call_operand.hbm [shape: f32[2,8,32], index: 0, kind: input, shape index: {}]   ;;  %s2433_s1 = inlined_call_operand.vmem [shape: f32[32,96], index: 1, kind: input, shape index: {}]   ;;  %s2434_s2 = inlined_call_operand.vmem [shape: f32[1,96], index: 2, kind: input, shape index: {}]   ;;  %s2435_s3 = inlined_call_operand.vmem [shape: f32[32,32], index: 3, kind: input, shape index: {}]   ;;  %s2436_s4 = inlined_call_operand.vmem [shape: f32[1,32], index: 4, kind: input, shape index: {}]   ;;  %s2437_s5 = inlined_call_operand.vmem [shape: f32[32,64], index: 5, kind: input, shape index: {}]   ;;  %s2438_s6 = inlined_call_operand.vmem [shape: f32[1,64], index: 6, kind: input, shape index: {}]   ;;  %s2439_s7 = inlined_call_operand.vmem [shape: f32[64,32], index: 7, kind: input, shape index: {}]   ;;  %s2440_s8 = inlined_call_operand.vmem [shape: f32[1,32], index: 8, kind: input, shape index: {}]   ;;  %s2441_s9 = inlined_call_operand.vmem [shape: f32[1,32], index: 9, kind: input, shape index: {}]   ;;  %s2442_s10 = inlined_call_operand.vmem [shape: f32[1,32], index: 10, kind: input, shape index: {}]   ;;  %s2443_s11 = inlined_call_operand.vmem [shape: f32[1,32], index: 11, kind: input, shape index: {}]   ;;  %s2444_s12 = inlined_call_operand.vmem [shape: f32[1,32], index: 12, kind: input, shape index: {}]   ;;  %s2445_s13 = inlined_call_operand.hbm [shape: f32[2,8,32], index: 13, kind: output, shape index: {}]  }
   0x1   :  { %20 = vsyncpa [#allocation4 + $0x1], 0 }
   0x2   :  { %21 = vsyncpa [#allocation5], 0 }
   0x3   :  { %23 = vsyncpa [#allocation5 + $0x1], 0  ;;  %s2094_s25 = smov 0   ;;  %s2096_s26 = smov 0  }
   0x4   :  { %s2098_s27 = smov 0   ;;  %s2100_s28 = smov 0  }
   0x5 LB: > { %2451 = sst [smem:[#allocation9_spill]] %s1991_s25  ;;  %s2115_s29 = sadd.s32 4294967295, %s2003_s28   ;;  %s2003_s28 = sphi %s2100_s28, %s2466_s28   ;;  %s1999_s27 = sphi %s2098_s27, %s2468_s27   ;;  %s1995_s26 = sphi %s2096_s26, %s2470_s26   ;;  %s1991_s25 = sphi %s2094_s25, %s2469_s25  }
   0x6   : > { %2452 = sst [smem:[#allocation10_spill]] %s1999_s27  ;;  %s1626_s30 = sadd.s32 4294967294, %s2003_s28  }
   0x7   : > { %s2119_s14 = sadd.s32 1, %s2003_s28   ;;  %s36_s15 = sadd.s32 1, %s1999_s27 }
   0x8   : > { %2453 = sst [smem:[#allocation11_spill]] %s2119_s14  ;;  %s33_s16 = ssub.s32 %s2003_s28, %s2119_s14 }
   0x9   : > { %p43_p0 = scmp.ne.s32.totalorder %s1999_s27, %s1995_s26  ;;  %p34_p1 = scmp.eq.s32.totalorder %s33_s16, 0 }
   0xa   : > { %p44_p2 = scmp.eq.s32.totalorder %s2003_s28, 0  ;;  %p49_p3 = scmp.ne.s32.totalorder %s1995_s26, %s1991_s25 }
   0xb   : > { %p50_p4 = scmp.eq.s32.totalorder %s2115_s29, 0  ;;  %p325_p7 = scmp.eq.s32.totalorder %s2115_s29, 1 }
   0xc   : > { %s2131_s17 = scalar_select %p34_p1, %s1999_s27, %s36_s15  }
   0xd   : > { %p2133_p5 = por %p44_p2, %p43_p0  ;;  %p2137_p6 = por %p50_p4, %p49_p3 }
   0xe   : > { %2454 = sst [smem:[#allocation12_spill]] %s2131_s17  ;;  %p331_p8 = scmp.eq.s32.totalorder %s1626_s30, 1 }
   0xf   : > { %p1836_p10 = scmp.lt.s32.totalorder %s2003_s28, 2  ;;  %p2144_p11 = por %p325_p7, %p43_p0 }
  0x10   : > { %p2148_p12 = por %p331_p8, %p49_p3  ;;  %s387_s22 = sand.u32 1, %s1999_s27  }
  0x11   : > { %s2457_s20 = scalar_select %p2144_p11, 1, 0 }
  0x12   : > { %s2458_s21 = scalar_select %p2148_p12, 1, 0 }
  0x13   : > { %s1630_s23 = sshll.u32 %s2003_s28, 7  ;;  %s1629_s24 = sshll.u32 %s387_s22, 3 }
  0x14   : > { %s2157_s17 = scalar_lea.hbm %s2432_s0, %s1630_s23  ;;  %s391_s30 = scalar_lea.vmem [#allocation3], %s1629_s24 }
  0x15   : > { %s398_s14 = sshll.u32 %s391_s30, 4  ;;  %p2161_p13 = pnand %p1836_p10, %p2133_p5  ;;  %s2165_s14 = int_to_ptr.vmem [resolvable:$true] %s398_s14 }
  0x16   : > { %s388_s15 = scalar_lea.sflag [#allocation4], %s387_s22  ;;  %s1907_s23 = scalar_lea.hbm %s2157_s17, 128 }
  0x17   : > { %p1908_p2 = scmp.ne.s32.totalorder %s2157_s17, %s1907_s23  ;;  %p1909_p3 = pneg %p2161_p13 }
  0x18   : > { %s1912_s16 = scalar_lea.hbm %s2432_s0, 256  ;;  %p1913_p5 = scmp.lt.u32.totalorder %s2157_s17, %s2432_s0 }
  0x19   : > { %p1910_p4 = pnand %p1909_p3, %p1908_p2  ;;  %p1914_p8 = scmp.lt.u32.totalorder %s1912_s16, %s1907_s23 }
  0x1a   : > { %p1916_p9 = scmp.lt.u32.totalorder %s1907_s23, %s2157_s17 }
  0x1b   : > { %p1911_p7 = pneg %p1910_p4  ;;  %p1915_p10 = por %p1914_p8, %p1913_p5 }
  0x1d   : > { %p1917_p0 = por %p1916_p9, %p1915_p10 }
  0x1f   : > { %p1918_p1 = pnand %p1917_p0, %p1911_p7 }
  0x21   : > { %1921 = shalt.err (!%p1918_p1)
}
  0x22   : > { %s1922_s22 = scalar_lea.vmem %s2165_s14, 128  ;;  %s2005_s18 = smov [#allocation3]  }
  0x23   : > { %p1923_p2 = scmp.ne.s32.totalorder %s2165_s14, %s1922_s22  ;;  %s1927_s24 = sshll.u32 %s2005_s18, 4  ;;  %s1928_s24 = int_to_ptr.vmem [resolvable:$false] %s1927_s24 }
  0x24   : > { %s1929_s27 = scalar_lea.vmem %s1928_s24, 256  ;;  %p1930_p11 = scmp.lt.s32.totalorder %s2165_s14, %s1928_s24 }
  0x25   : > { %p1925_p4 = pnand %p1923_p2, %p1909_p3  ;;  %p1931_p5 = scmp.lt.s32.totalorder %s1929_s27, %s1922_s22 }
  0x27   : > { %p1926_p12 = pneg %p1925_p4  ;;  %p1932_p8 = por %p1931_p5, %p1930_p11 }
  0x29   : > { %p1933_p9 = pnand %p1932_p8, %p1926_p12 }
  0x2b   : > { %1936 = shalt.err (!%p1933_p9)
}
  0x2c   : > { %1831 = dma.hbm_to_vmem [thread:$0]  (!%p2161_p13), %s2157_s17, 128, %s2165_s14, %s388_s15  }
  0x2d   : > { %p2460_p0 = scmp.lt.s32.totalorder %s2003_s28, 3  ;;  %p2461_p1 = scmp.ge.s32.totalorder %s2003_s28, 1 }
  0x2f   : > { %p404_p3 = pnand %p2461_p1, %p2460_p0 }
  0x30   : > { %s2199_s23 = sand.u32 (!%p404_p3), 1, %s1995_s26  }
  0x31   : > { %407 = sbr.rel (%p404_p3) target bundleno = 2605 (0xa2d), region = 72  ;;  %s1632_s16 = sshll.u32 (!%p404_p3), %s2199_s23, 3 }
  0x32   : > { %s410_s30 = scalar_lea.sflag (!%p404_p3), [#allocation4], %s2199_s23  ;;  %s413_s25 = scalar_lea.vmem (!%p404_p3), [#allocation3], %s1632_s16 }
  0x38   : > { %1982 = dma.done.wait (%p2137_p6), %s410_s30, 128  }
  0x39   : > { %1984 = vsyncadd (%p2137_p6), %s410_s30, 4294967168  ;;  %v2006_v0 = vmov 0.0|0.0   ;;  %vm2007_vm0 = vmmov 0   ;;  %v2008_v1 = vmov 0.0   ;;  %v457_v2 = vld [vmem:[%s2433_s1] sm:$0xff]  ;;  %v458_v3 = vld [vmem:[%s2433_s1 + $0x8] sm:$0xff] }
  0x3a   : > { %1794 = vmatprep.subr.bf16.mxu1 %v2006_v0  ;;  %1710 = vmatprep.mubr.msk.f32.mxu1 %vm2007_vm0, %v2008_v1  ;;  %v459_v4 = vld [vmem:[%s2433_s1 + $0x10] sm:$0xff]  ;;  %v1795_v5 = vpack.c.bf16 %v458_v3, %v457_v2  ;;  %v460_v6 = vld [vmem:[%s2433_s1 + $0x18] sm:$0xff]  ;;  %vm468_vm1 = vcmask 261120   ;;  %v1634_v9 = vld [vmem:[%s2434_s2] ss:$0 sm:$0xff]  ;;  %s2009_s17 = smov 120  }
  0x3b   : > { %1723 = vmatprep.subr.mxu0 %v2008_v1  ;;  %1725 = vmatprep.mubr.msk.f32.mxu0 %vm2007_vm0, %v2008_v1  ;;  %v1798_v7 = vpack.c.bf16 %v460_v6, %v459_v4  ;;  %v2228_v8 = vld [vmem:[%s413_s25] sm:$0xff]  ;;  %s2010_s25 = smov 96   ;;  %s2011_s15 = smov 80   ;;  %vm545_vm2 = vcmask 64512   ;;  %vm877_vm3 = vcmask 130112   ;;  %vm1048_vm4 = vcmask 195712  }
  0x3c   : > { %1796 = vmatpush3.bf16.msra.mxu1 %v1795_v5  ;;  %s2012_s19 = smov 88   ;;  %s2013_s22 = smov 72   ;;  %vm1219_vm5 = vcmask 261312   ;;  %vm1437_vm6 = vcmask 523264  }
  0x3d   : > { %1797 = vmatprep.subr.bf16.mxu1 %v2006_v0  ;;  %s2014_s18 = smov 112   ;;  %s2015_s24 = smov 104  }
  0x3e   : > { %s2016_s27 = smov 56   ;;  %s2017_s30 = smov 64  }
  0x3f   : > { %s2018_s14 = smov 48   ;;  %p2462_p11 = scmp.ne.s32.totalorder %s2457_s20, 0 }
  0x40   : > { %1799 = vmatpush3.bf16.msra.mxu1 %v1798_v7 }
  0x41   : > { %1713 = vmatprep.subr.mxu1 %v2008_v1 }
  0x43   : > { %1711 = vmatmul.mubr.msk.f32.vlgmr.msra.gmra.mrb[0].mxu1 %vm468_vm1, %v2228_v8 }
  0x44   : > { %1715 = vmatprep.mubr.msk.f32.mxu1 %vm2007_vm0, %v2008_v1 }
 0x116   : > { %v538_v10 = vpop.f32.mrb[0].mxu1 }
 0x117   : > { %v2238_v11 = vadd.f32 %v1634_v9, %v538_v10  ;;  %v1712_v12 = vpop.f32.mrb[1].mxu1 }
 0x118   : > { %v1223_v12 = vld [vmem:[%s2435_s3 + $0x8] sm:$0xff] }
 0x119   : > { %708 = vrot.lane.b32.xlu1 %v2238_v11, %s2009_s17  ;;  %543 = vrot.lane.b32.xlu0 %v2238_v11, %s2010_s25  ;;  %s2019_s17 = smov 40   ;;  %s2020_s25 = smov 8  }
 0x11d   : > { %881 = vrot.lane.b32.xlu1 %v2238_v11, %s2011_s15  ;;  %710 = vrot.lane.b32.xlu0 %v2238_v11, %s2012_s19 }
 0x121   : > { %1052 = vrot.lane.b32.xlu1 %v2238_v11, %s2013_s22  ;;  %879 = vrot.lane.b32.xlu0 %v2238_v11, %s2014_s18 }
 0x125   : > { %1050 = vrot.lane.b32.xlu0 %v2238_v11, %s2015_s24  ;;  %s1543_s24 = scalar_lea.sflag [#allocation5], %s2199_s23 }
 0x18b   : > { %v709_v13 = vpop.permute.xlu1 %708  ;;  %v544_v14 = vpop.permute.xlu0 %543 }
 0x18c   : > { %1714 = vmatpush3.xpose.msk.msra.mxu1 %vm545_vm2, %v544_v14  ;;  %v1224_v14 = vld [vmem:[%s2435_s3 + $0x10] sm:$0xff] }
 0x18d   : > { %1718 = vmatprep.subr.mxu1 %v2008_v1 }
 0x18f   : > { %1716 = vmatmul.mubr.msk.f32.vlgmr.msra.gmra.mrb[2].mxu1 %vm545_vm2, %v2238_v11  ;;  %v711_v15 = vpop.permute.xlu0 %710  ;;  %v882_v16 = vpop.permute.xlu1 %881 }
 0x190   : > { %1724 = vmatpush3.xpose.msk.msra.mxu0 %vm545_vm2, %v711_v15  ;;  %1720 = vmatprep.mubr.msk.f32.mxu1 %vm2007_vm0, %v2008_v1  ;;  %v1225_v15 = vld [vmem:[%s2435_s3 + $0x18] sm:$0xff] }
 0x191   : > { %1733 = vmatprep.subr.mxu0 %v2008_v1 }
 0x193   : > { %1726 = vmatmul.mubr.msk.f32.vlgmr.msra.gmra.mrb[0].mxu0 %vm545_vm2, %v709_v13  ;;  %v880_v17 = vpop.permute.xlu0 %879  ;;  %v1053_v18 = vpop.permute.xlu1 %1052 }
 0x194   : > { %1734 = vmatpush3.xpose.msk.msra.mxu0 %vm545_vm2, %v882_v16  ;;  %1735 = vmatprep.mubr.msk.f32.mxu0 %vm2007_vm0, %v2008_v1  ;;  %v1804_v16 = vpack.c.bf16 %v1225_v15, %v1224_v14 }
 0x195   : > { %1743 = vmatprep.subr.mxu0 %v2008_v1 }
 0x197   : > { %1736 = vmatmul.mubr.msk.f32.vlgmr.msra.gmra.mrb[2].mxu0 %vm545_vm2, %v880_v17  ;;  %v1051_v19 = vpop.permute.xlu0 %1050 }
 0x198   : > { %1744 = vmatpush3.xpose.msk.msra.mxu0 %vm545_vm2, %v1053_v18  ;;  %1745 = vmatprep.mubr.msk.f32.mxu0 %vm2007_vm0, %v2008_v1 }
 0x199   : > { %1800 = vmatprep.subr.bf16.mxu0 %v2006_v0 }
 0x19b   : > { %1746 = vmatmul.mubr.msk.f32.vlgmr.msra.gmra.mrb[4].mxu0 %vm545_vm2, %v1051_v19 }
 0x19c   : > { %1761 = vmatprep.mubr.msk.f32.mxu0 %vm2007_vm0, %v2008_v1 }
 0x262   : > { %v616_v20 = vpop.f32.mrb[2].mxu1 }
 0x263   : > { %v1717_v21 = vpop.f32.mrb[3].mxu1  ;;  %v620_v22 = vsel %vm545_vm2, %v616_v20, -inf }
 0x264   : > { %621 = vmax.xlane.f32.xlu1 %v620_v22 }
 0x266   : > { %v782_v23 = vpop.f32.mrb[0].mxu0 }
 0x267   : > { %v1727_v24 = vpop.f32.mrb[1].mxu0  ;;  %v786_v25 = vsel %vm545_vm2, %v782_v23, -inf }
 0x268   : > { %787 = vmax.xlane.f32.xlu0 %v786_v25  ;;  %v1648_v25 = vld [vmem:[%s2436_s4] ss:$0 sm:$0xff] }
 0x26a   : > { %v953_v26 = vpop.f32.mrb[2].mxu0 }
 0x26b   : > { %v1737_v27 = vpop.f32.mrb[3].mxu0  ;;  %v957_v28 = vsel %vm545_vm2, %v953_v26, -inf }
 0x26c   : > { %958 = vmax.xlane.f32.xlu0 %v957_v28 }
 0x26e   : > { %v1124_v29 = vpop.f32.mrb[4].mxu0 }
 0x26f   : > { %v1747_v30 = vpop.f32.mrb[5].mxu0  ;;  %v1128_v31 = vsel %vm545_vm2, %v1124_v29, -inf }
 0x270   : > { %1129 = vmax.xlane.f32.xlu1 %v1128_v31 }
 0x281   : > { %797 = vrot.lane.b32.xlu1 %v2238_v11, %s2016_s27 }
 0x2f1   : > { %v622_v32 = vpop.xlane.xlu1 %621 }
 0x2f2   : > { %v623_v33 = vsub.f32 %v616_v20, %v622_v32 }
 0x2f4   : > { %v624_v34 = vmul.f32 1.442695, %v623_v33 }
 0x2f5   : > { %v788_v35 = vpop.xlane.xlu0 %787 }
 0x2f6   : > { %1887 = vpow2.f32 %v624_v34  ;;  %v789_v36 = vsub.f32 %v782_v23, %v788_v35 }
 0x2f8   : > { %v790_v37 = vmul.f32 1.442695, %v789_v36  ;;  %v1338_v36 = vld [vmem:[%s2437_s5 + $0x8] sm:$0xff] }
 0x2f9   : > { %v959_v47 = vpop.xlane.xlu0 %958 }
 0x2fa   : > { %1889 = vpow2.f32 %v790_v37  ;;  %v960_v48 = vsub.f32 %v953_v26, %v959_v47  ;;  %v1427_v47 = vld [vmem:[%s2439_s7 + $0x28] sm:$0xff] }
 0x2fc   : > { %v961_v49 = vmul.f32 1.442695, %v960_v48 }
 0x2fd   : > { %v1130_v38 = vpop.xlane.xlu1 %1129 }
 0x2fe   : > { %v1131_v39 = vsub.f32 %v1124_v29, %v1130_v38  ;;  %v1340_v38 = vld [vmem:[%s2437_s5 + $0x18] sm:$0xff] }
 0x300   : > { %v1888_v40 = vpop.eup %1887  ;;  %v1132_v41 = vmul.f32 1.442695, %v1131_v39 }
 0x301   : > { %v626_v42 = vsel %vm545_vm2, %v1888_v40, 0.0  ;;  %v798_v52 = vpop.permute.xlu1 %797 }
 0x302   : > { %1891 = vpow2.f32 %v1132_v41  ;;  %627 = vadd.xlane.f32.xlu0 %v626_v42  ;;  %v1423_v41 = vld [vmem:[%s2439_s7 + $0x8] sm:$0xff]  ;;  %v1424_v42 = vld [vmem:[%s2439_s7 + $0x10] sm:$0xff] }
 0x303   : > { %1893 = vpow2.f32 %v961_v49 }
 0x304   : > { %v1890_v43 = vpop.eup %1889 }
 0x305   : > { %v792_v44 = vsel %vm545_vm2, %v1890_v43, 0.0 }
 0x306   : > { %793 = vadd.xlane.f32.xlu1 %v792_v44  ;;  %v1425_v44 = vld [vmem:[%s2439_s7 + $0x18] sm:$0xff] }
 0x30c   : > { %v1892_v45 = vpop.eup %1891 }
 0x30d   : > { %v1134_v46 = vsel %vm545_vm2, %v1892_v45, 0.0  ;;  %v1894_v50 = vpop.eup %1893 }
 0x30e   : > { %1135 = vadd.xlane.f32.xlu1 %v1134_v46  ;;  %v963_v51 = vsel %vm545_vm2, %v1894_v50, 0.0  ;;  %v1426_v46 = vld [vmem:[%s2439_s7 + $0x20] sm:$0xff] }
 0x30f   : > { %v1819_v48 = vpack.c.bf16 %v1427_v47, %v1426_v46 }
 0x318   : > { %631 = vrot.lane.b32.xlu0 %v2238_v11, %s2017_s30 }
 0x31f   : > { %968 = vrot.lane.b32.xlu1 %v2238_v11, %s2018_s14 }
 0x337   : > { %964 = vadd.xlane.f32.xlu0 %v963_v51 }
 0x34d   : > { %1139 = vrot.lane.b32.xlu0 %v2238_v11, %s2019_s17  ;;  %v1222_v11 = vld [vmem:[%s2435_s3] sm:$0xff]  ;;  %s2021_s17 = smov 16  }
 0x34e   : > { %v1801_v13 = vpack.c.bf16 %v1223_v12, %v1222_v11 }
 0x350   : > { %1802 = vmatpush3.bf16.msra.mxu0 %v1801_v13 }
 0x351   : > { %1803 = vmatprep.subr.bf16.mxu0 %v2006_v0 }
 0x354   : > { %1805 = vmatpush3.bf16.msra.mxu0 %v1804_v16 }
 0x355   : > { %1812 = vmatprep.subr.bf16.mxu0 %v2006_v0 }
 0x38f   : > { %v628_v53 = vpop.xlane.xlu0 %627 }
 0x390   : > { %1895 = vrcp.f32 %v628_v53  ;;  %v1650_v53 = vld [vmem:[%s2441_s9] ss:$0 sm:$0xff] }
 0x393   : > { %v632_v54 = vpop.permute.xlu0 %631  ;;  %v794_v55 = vpop.xlane.xlu1 %793 }
 0x394   : > { %1897 = vrcp.f32 %v794_v55  ;;  %1719 = vmatpush3.msra.mxu1 %v632_v54  ;;  %v1651_v55 = vld [vmem:[%s2442_s10] ss:$0 sm:$0xff] }
 0x395   : > { %1728 = vmatprep.subr.mxu1 %v2008_v1 }
 0x39a   : > { %v1896_v56 = vpop.eup %1895 }
 0x39b   : > { %v630_v57 = vmul.f32 %v1896_v56, %v1888_v40  ;;  %v1136_v58 = vpop.xlane.xlu1 %1135  ;;  %v1422_v40 = vld [vmem:[%s2439_s7] sm:$0xff] }
 0x39d   : > { %1721 = vmatmul.mubr.msk.f32.vlgmr.msra.gmra.mrb[4].mxu1 %vm545_vm2, %v630_v57 }
 0x39e   : > { %v1898_v59 = vpop.eup %1897  ;;  %1729 = vmatpush3.msra.mxu1 %v798_v52  ;;  %1730 = vmatprep.mubr.msk.f32.mxu1 %vm2007_vm0, %v2008_v1 }
 0x39f   : > { %v796_v60 = vmul.f32 %v1898_v59, %v1890_v43  ;;  %v969_v61 = vpop.permute.xlu1 %968  ;;  %1738 = vmatprep.subr.mxu1 %v2008_v1  ;;  %v1813_v43 = vpack.c.bf16 %v1423_v41, %v1422_v40 }
 0x3a1   : > { %1731 = vmatmul.mubr.msk.f32.vlgmr.msra.gmra.mrb[6].mxu1 %vm545_vm2, %v796_v60  ;;  %v1652_v60 = vld [vmem:[%s2438_s6] ss:$0 sm:$0xff] }
 0x3a2   : > { %1739 = vmatpush3.msra.mxu1 %v969_v61  ;;  %1740 = vmatprep.mubr.msk.f32.mxu1 %vm2007_vm0, %v2008_v1 }
 0x3a3   : > { %1748 = vmatprep.subr.mxu1 %v2008_v1 }
 0x3c4   : > { %v965_v62 = vpop.xlane.xlu0 %964 }
 0x3c5   : > { %1899 = vrcp.f32 %v965_v62 }
 0x3c6   : > { %1901 = vrcp.f32 %v1136_v58  ;;  %v1429_v58 = vld [vmem:[%s2439_s7 + $0x38] sm:$0xff] }
 0x3c8   : > { %v1140_v4 = vpop.permute.xlu0 %1139 }
 0x3cf   : > { %v1900_v63 = vpop.eup %1899 }
 0x3d0   : > { %v967_v2 = vmul.f32 %v1900_v63, %v1894_v50  ;;  %v1902_v3 = vpop.eup %1901 }
 0x3d1   : > { %v1138_v5 = vmul.f32 %v1902_v3, %v1892_v45  ;;  %v1816_v45 = vpack.c.bf16 %v1425_v44, %v1424_v42  ;;  %v1654_v3 = vld [vmem:[%s2440_s8] ss:$0 sm:$0xff] }
 0x3d2   : > { %1741 = vmatmul.mubr.msk.f32.vlgmr.msra.gmra.mrb[8].mxu1 %vm545_vm2, %v967_v2 }
 0x3d3   : > { %1749 = vmatpush3.msra.mxu1 %v1140_v4  ;;  %1750 = vmatprep.mubr.msk.f32.mxu1 %vm2007_vm0, %v2008_v1 }
 0x3d4   : > { %1806 = vmatprep.subr.bf16.mxu1 %v2006_v0 }
 0x3d6   : > { %1751 = vmatmul.mubr.msk.f32.vlgmr.msra.gmra.mrb[10].mxu1 %vm545_vm2, %v1138_v5 }
 0x3d7   : > { %1772 = vmatprep.mubr.msk.f32.mxu1 %vm2007_vm0, %v2008_v1 }
 0x470   : > { %v703_v6 = vpop.f32.mrb[4].mxu1 }
 0x471   : > { %707 = vst.msk [vmem:[#allocation2] sm:$0xff] %vm545_vm2, %v703_v6  ;;  %v1722_v7 = vpop.f32.mrb[5].mxu1 }
 0x474   : > { %v869_v9 = vpop.f32.mrb[6].mxu1 }
 0x475   : > { %874 = vrot.lane.b32.xlu1 %v869_v9, %s2020_s25  ;;  %v1732_v10 = vpop.f32.mrb[7].mxu1  ;;  %s2022_s25 = smov 24  }
 0x4a5   : > { %v1040_v17 = vpop.f32.mrb[8].mxu1 }
 0x4a6   : > { %1045 = vrot.lane.b32.xlu0 %v1040_v17, %s2021_s17  ;;  %v1742_v18 = vpop.f32.mrb[9].mxu1  ;;  %s1659_s17 = sshll.u32 %s2115_s29, 7  ;;  %s2023_s29 = smov [#allocation6]  }
 0x4a7   : > { %s2387_s18 = scalar_lea.hbm %s2445_s13, %s1659_s17 }
 0x4a9   : > { %v1211_v19 = vpop.f32.mrb[10].mxu1 }
 0x4aa   : > { %1216 = vrot.lane.b32.xlu1 %v1211_v19, %s2022_s25  ;;  %v1752_v20 = vpop.f32.mrb[11].mxu1  ;;  %v1656_v19 = vld [vmem:[%s2443_s11] ss:$0 sm:$0xff]  ;;  %s455_s25 = scalar_lea.vmem [#allocation6], %s1632_s16  ;;  %s1941_s16 = sshll.u32 %s2023_s29, 4  ;;  %s1942_s16 = int_to_ptr.vmem [resolvable:$false] %s1941_s16 }
 0x4ab   : > { %s1556_s15 = sshll.u32 %s455_s25, 4  ;;  %s1943_s30 = scalar_lea.vmem %s1942_s16, 256  ;;  %s2389_s15 = int_to_ptr.vmem [resolvable:$true] %s1556_s15 }
 0x4ac   : > { %s1937_s27 = scalar_lea.vmem %s2389_s15, 128  ;;  %p1944_p7 = scmp.lt.s32.totalorder %s2389_s15, %s1942_s16 }
 0x4ad   : > { %p1938_p6 = scmp.ne.s32.totalorder %s2389_s15, %s1937_s27  ;;  %p1945_p10 = scmp.lt.s32.totalorder %s1943_s30, %s1937_s27 }
 0x4af   : > { %p1939_p12 = pnand %p1938_p6, %p2462_p11  ;;  %p1946_p2 = por %p1945_p10, %p1944_p7 }
 0x4b1   : > { %p1940_p13 = pneg %p1939_p12 }
 0x4b3   : > { %p1947_p4 = pnand %p1946_p2, %p1940_p13 }
 0x4e7   : > { %v875_v21 = vpop.permute.xlu1 %874 }
 0x4e8   : > { %878 = vst.msk [vmem:[#allocation2] sm:$0xff] %vm877_vm3, %v875_v21  ;;  %v1657_v21 = vld [vmem:[%s2444_s12] ss:$0 sm:$0xff] }
 0x518   : > { %v1046_v22 = vpop.permute.xlu0 %1045 }
 0x519   : > { %1049 = vst.msk [vmem:[#allocation2] sm:$0xff] %vm1048_vm4, %v1046_v22 }
 0x51c   : > { %v1217_v23 = vpop.permute.xlu1 %1216 }
 0x51d   : > { %1220 = vst.msk [vmem:[#allocation2] sm:$0xff] %vm1219_vm5, %v1217_v23 }
 0x524   : > { %v1221_v24 = vld [vmem:[#allocation2] sm:$0xff] }
 0x525   : > { %1762 = vmatmul.mubr.msk.f32.vlgmr.msra.gmra.mrb[6].mxu0 %vm468_vm1, %v1221_v24 }
 0x526   : > { %1791 = vmatprep.mubr.msk.f32.mxu0 %vm2007_vm0, %v2008_v1  ;;  %v1337_v1 = vld [vmem:[%s2437_s5] sm:$0xff]  ;;  %1814 = vmatpush3.bf16.msra.mxu0 %v1813_v43 }
 0x527   : > { %v1807_v37 = vpack.c.bf16 %v1338_v36, %v1337_v1  ;;  %1815 = vmatprep.subr.bf16.mxu0 %v2006_v0 }
 0x529   : > { %1808 = vmatpush3.bf16.msra.mxu1 %v1807_v37 }
 0x52a   : > { %1809 = vmatprep.subr.bf16.mxu1 %v2006_v0  ;;  %1817 = vmatpush3.bf16.msra.mxu0 %v1816_v45 }
 0x52b   : > { %1818 = vmatprep.subr.bf16.mxu0 %v2006_v0 }
 0x52e   : > { %1820 = vmatpush3.bf16.msra.mxu0 %v1819_v48 }
 0x52f   : > { %1821 = vmatprep.subr.bf16.mxu0 %v2006_v0  ;;  %v1428_v0 = vld [vmem:[%s2439_s7 + $0x30] sm:$0xff] }
 0x530   : > { %v1822_v59 = vpack.c.bf16 %v1429_v58, %v1428_v0 }
 0x532   : > { %1823 = vmatpush3.bf16.msra.mxu0 %v1822_v59 }
 0x5f8   : > { %v1302_v26 = vpop.f32.mrb[6].mxu0 }
 0x5f9   : > { %v1303_v27 = vadd.f32 %v1648_v25, %v1302_v26  ;;  %v1763_v28 = vpop.f32.mrb[7].mxu0 }
 0x5fb   : > { %v1306_v29 = vadd.f32 %v1303_v27, %v2228_v8  ;;  %v1339_v8 = vld [vmem:[%s2437_s5 + $0x10] sm:$0xff] }
 0x5fc   : > { %v1810_v39 = vpack.c.bf16 %v1340_v38, %v1339_v8 }
 0x5fd   : > { %v1307_v30 = vsel %vm468_vm1, %v1306_v29, 0.0 }
 0x5fe   : > { %1308 = vadd.xlane.f32.xlu0 %v1307_v30  ;;  %1811 = vmatpush3.bf16.msra.mxu1 %v1810_v39 }
 0x68b   : > { %v1309_v31 = vpop.xlane.xlu0 %1308 }
 0x68c   : > { %v1311_v32 = vmul.f32 0.03125, %v1309_v31 }
 0x68e   : > { %v1312_v33 = vsub.f32 %v1306_v29, %v1311_v32 }
 0x690   : > { %v1313_v34 = vmul.f32 %v1312_v33, %v1312_v33 }
 0x692   : > { %v1314_v35 = vsel %vm468_vm1, %v1313_v34, 0.0 }
 0x693   : > { %1315 = vadd.xlane.f32.xlu1 %v1314_v35 }
 0x720   : > { %v1316_v49 = vpop.xlane.xlu1 %1315 }
 0x721   : > { %v1317_v50 = vmul.f32 0.03125, %v1316_v49 }
 0x723   : > { %v1318_v51 = vadd.f32 1e-05, %v1317_v50 }
 0x725   : > { %1903 = vrsqrt.f32 %v1318_v51 }
 0x72f   : > { %v1904_v52 = vpop.eup %1903 }
 0x730   : > { %v1320_v54 = vmul.f32 %v1904_v52, %v1312_v33 }
 0x732   : > { %v1328_v56 = vmul.f32 %v1650_v53, %v1320_v54 }
 0x734   : > { %v1336_v57 = vadd.f32 %v1651_v55, %v1328_v56 }
 0x736   : > { %1773 = vmatmul.mubr.msk.f32.vlgmr.msra.gmra.mrb[12].mxu1 %vm468_vm1, %v1336_v57 }
 0x809   : > { %v1417_v61 = vpop.f32.mrb[12].mxu1 }
 0x80a   : > { %v1418_v62 = vadd.f32 %v1652_v60, %v1417_v61  ;;  %v1774_v63 = vpop.f32.mrb[13].mxu1 }
 0x80c   : > { %v1421_v2 = vmax.f32 %v1418_v62, 0.0 }
 0x80e   : > { %1792 = vmatmul.mubr.msk.f32.vlgmr.msra.gmra.mrb[8].mxu0 %vm1437_vm6, %v1421_v2 }
 0x8e1   : > { %v1507_v4 = vpop.f32.mrb[8].mxu0 }
 0x8e2   : > { %v1508_v5 = vadd.f32 %v1654_v3, %v1507_v4  ;;  %v1793_v6 = vpop.f32.mrb[9].mxu0 }
 0x8e4   : > { %v1511_v7 = vadd.f32 %v1508_v5, %v1336_v57 }
 0x8e6   : > { %v1512_v9 = vsel %vm468_vm1, %v1511_v7, 0.0 }
 0x8e7   : > { %1513 = vadd.xlane.f32.xlu0 %v1512_v9 }
 0x974   : > { %v1514_v10 = vpop.xlane.xlu0 %1513 }
 0x975   : > { %v1515_v11 = vmul.f32 0.03125, %v1514_v10 }
 0x977   : > { %v1516_v12 = vsub.f32 %v1511_v7, %v1515_v11 }
 0x979   : > { %v1517_v13 = vmul.f32 %v1516_v12, %v1516_v12 }
 0x97b   : > { %v1518_v14 = vsel %vm468_vm1, %v1517_v13, 0.0 }
 0x97c   : > { %1519 = vadd.xlane.f32.xlu0 %v1518_v14 }
 0xa09   : > { %v1520_v15 = vpop.xlane.xlu0 %1519 }
 0xa0a   : > { %v1521_v16 = vmul.f32 0.03125, %v1520_v15 }
 0xa0c   : > { %v1522_v17 = vadd.f32 1e-05, %v1521_v16 }
 0xa0e   : > { %1905 = vrsqrt.f32 %v1522_v17 }
 0xa18   : > { %v1906_v18 = vpop.eup %1905 }
 0xa19   : > { %v1524_v20 = vmul.f32 %v1906_v18, %v1516_v12 }
 0xa1b   : > { %v1532_v22 = vmul.f32 %v1656_v19, %v1524_v20 }
 0xa1d   : > { %v1540_v23 = vadd.f32 %v1657_v21, %v1532_v22 }
 0xa1f   : > { %1541 = vst.msk [vmem:[%s455_s25] sm:$0xff] %vm468_vm1, %v1540_v23 }
 0xa20   : > { %1950 = shalt.err (!%p1947_p4)
}
 0xa21   : > { %s1951_s23 = scalar_lea.hbm %s2387_s18, 128  ;;  %s1955_s25 = scalar_lea.hbm %s2445_s13, 256 }
 0xa22   : > { %p1952_p5 = scmp.ne.s32.totalorder %s2387_s18, %s1951_s23  ;;  %p1956_p0 = scmp.lt.u32.totalorder %s2387_s18, %s2445_s13 }
 0xa23   : > { %p1957_p1 = scmp.lt.u32.totalorder %s1955_s25, %s1951_s23  ;;  %p1959_p6 = scmp.lt.u32.totalorder %s1951_s23, %s2387_s18 }
 0xa24   : > { %p1953_p8 = pnand %p1952_p5, %p2462_p11 }
 0xa25   : > { %p1958_p3 = por %p1957_p1, %p1956_p0 }
 0xa26   : > { %p1954_p9 = pneg %p1953_p8 }
 0xa27   : > { %p1960_p12 = por %p1959_p6, %p1958_p3 }
 0xa29   : > { %p1961_p13 = pnand %p1960_p12, %p1954_p9 }
 0xa2b   : > { %1964 = shalt.err (!%p1961_p13)
}
 0xa2c   : > { %1826 = dma.vmem_to_hbm [thread:$0]  (%p2462_p11), %s2389_s15, 128, %s2387_s18, %s1543_s24  }
 0xa2d PF: > { %s2463_s27 = sld [smem:[#allocation9_spill]]  ;;  %p2464_p7 = scmp.ne.s32.totalorder %s2458_s21, 0 }
 0xa2e   : > { %p2465_p10 = scmp.ge.s32.totalorder %s2003_s28, 2 }
 0xa30   : > { %p1833_p2 = pnand %p2465_p10, %p2464_p7 }
 0xa33   : > { %s1568_s29 = sand.u32 1, %s2463_s27  }
 0xa34   : > { %s1569_s16 = scalar_lea.sflag [#allocation5], %s1568_s29 }
 0xa35   : > { %1986 = dma.done.wait (!%p1833_p2), %s1569_s16, 128  }
 0xa36   : > { %1988 = vsyncadd (!%p1833_p2), %s1569_s16, 4294967168  ;;  %s2466_s28 = sld [smem:[#allocation11_spill]]  ;;  %s2467_s30 = sld [smem:[#allocation10_spill]] }
 0xa37   : > { %s2468_s27 = sld [smem:[#allocation12_spill]]  ;;  %s2469_s25 = smov %s1995_s26 }
 0xa3c   : > { %p26_p4 = scmp.ge.s32.totalorder %s2466_s28, 4   ;;  %s2470_s26 = smov %s2467_s30 }
 0xa3e   :  { %28 = sbr.rel (!%p26_p4) target bundleno = 5 (0x5), region = 117 }
 0xa45   :  { %1574 = vsyncpa [#allocation4], 1 }
 0xa46   :  { %1576 = vsyncpa [#allocation4 + $0x1], 1 }
 0xa47   :  { %1577 = vsyncpa [#allocation5], 1 }
 0xa48   :  { %1579 = vsyncpa [#allocation5 + $0x1], 1 }

</bundles_post_ra>
